<compile_context>
chip_gen: v7x
topology: tpu7x:2x2x1
jax: 0.10.0
libtpu: 0.0.40
codegen_flags: <defaults>
</compile_context>

<pallas_src>
import numpy as np
import jax
import jax.numpy as jnp
from jax.experimental import pallas as pl
from jax.experimental.pallas import tpu as pltpu

A_CUBIC = -0.75
BN_EPS = 1e-5
_VMEM_LIMIT_BYTES = 48 * 1024 * 1024   # explicit scoped-VMEM limit


# ----------------------------------------------------------------------------
# Host-side construction of the linear operators (glue, plain numpy).
# ----------------------------------------------------------------------------
def adaptive_avg_pool_matrix(L, s):
    """(s, L) matrix implementing PyTorch AdaptiveAvgPool bins along one axis."""
    P = np.zeros((s, L), np.float32)
    for i in range(s):
        start = (i * L) // s
        end = -((-(i + 1) * L) // s)  # ceil((i+1)*L/s)
        P[i, start:end] = 1.0 / (end - start)
    return P


def _cc1(x, A=A_CUBIC):
    return ((A + 2.0) * x - (A + 3.0)) * x * x + 1.0


def _cc2(x, A=A_CUBIC):
    return ((A * x - 5.0 * A) * x + 8.0 * A) * x - 4.0 * A


def bicubic_matrix(L_out, L_in):
    """(L_out, L_in) 1-D bicubic interpolation operator, align_corners=True,
    a=-0.75, border clamp (PyTorch upsample_bicubic2d semantics)."""
    M = np.zeros((L_out, L_in), np.float64)
    scale = (np.float32(L_in - 1) / np.float32(L_out - 1)
             if L_out > 1 else np.float32(0.0))
    for i in range(L_out):
        real = float(np.float32(i) * scale)
        ix = int(np.floor(real))
        t = real - ix
        coeffs = [_cc2(t + 1.0), _cc1(t), _cc1(1.0 - t), _cc2(2.0 - t)]
        for k in range(4):
            idx = min(max(ix - 1 + k, 0), L_in - 1)
            M[i, idx] += coeffs[k]
    return M.astype(np.float32)


def fold_bn(gamma, beta, mean, var, eps=BN_EPS):
    a = gamma / jnp.sqrt(var + eps)
    b = beta - mean * a
    return a.astype(jnp.float32), b.astype(jnp.float32)


# ----------------------------------------------------------------------------
# Pallas kernel 1: all PPM stages fused (pool -> 1x1 conv(+BN scale) -> +bias
# -> ReLU -> bicubic upsample) + direct slice-writes of the concatenated
# output block (torch concat order, no in-VMEM concat temp).
# ----------------------------------------------------------------------------
def _fused_stage_kernel(x_ref, p_ref, w_ref, b_ref, m_ref, o_ref):
    S, C1, C2 = w_ref.shape          # (num_stages, C1, C2)
    SSP = m_ref.shape[-1]            # padded pooled-pixel count per stage
    x = x_ref[0]                     # (HW, C1), bf16

    # One combined pool matmul for all stages: (S*SSP, HW) @ (HW, C1), bf16 MXU.
    pooled = jnp.dot(p_ref[...], x, preferred_element_type=jnp.float32)

    # Identity branch: channels [0, C1). Lane-aligned static slice store.
    o_ref[0, :, 0:C1] = x.astype(o_ref.dtype)

    for k in range(S):
        seg = pooled[k * SSP:(k + 1) * SSP].astype(jnp.bfloat16)     # (SSP, C1)
        # 1x1 conv with BN scale folded into w; accumulate f32.
        y = jnp.dot(seg, w_ref[k], preferred_element_type=jnp.float32)
        y = jnp.maximum(y + b_ref[k], 0.0)                           # +bias, ReLU
        # Padded pooled rows give ReLU(bn_b) garbage, but the matching interp
        # columns are zero, so they contribute nothing to `up`.
        up = jnp.dot(m_ref[k], y.astype(jnp.bfloat16),
                     preferred_element_type=jnp.float32)             # (HW, C2)
        # torch: outs = [x] + outs[::-1]  ->  stage k lands at slot S-1-k.
        off = C1 + (S - 1 - k) * C2
        o_ref[0, :, off:off + C2] = up.astype(o_ref.dtype)


def fused_ppm_stages(x_flat, params):
    """x_flat: (N, HW, C1) bf16 -> (N, HW, C1 + S*C2) bf16 concat tensor."""
    N, HW, C1 = x_flat.shape
    pool = params["pool_cat"]       # (S*SSP, HW) bf16
    w = params["stage_w"]           # (S, C1, C2) bf16  (BN scale folded in)
    b = params["stage_b"]           # (S, 1, C2) f32
    m = params["interp_all"]        # (S, HW, SSP) bf16
    S, _, C2 = w.shape
    SSP = m.shape[-1]
    Ccat = C1 + S * C2

    return pl.pallas_call(
        _fused_stage_kernel,
        out_shape=jax.ShapeDtypeStruct((N, HW, Ccat), jnp.bfloat16),
        grid=(N,),
        in_specs=[
            pl.BlockSpec((1, HW, C1), lambda n: (n, 0, 0)),
            # Constant-index operands: DMA'd once (block index never changes).
            pl.BlockSpec((S * SSP, HW), lambda n: (0, 0)),
            pl.BlockSpec((S, C1, C2), lambda n: (0, 0, 0)),
            pl.BlockSpec((S, 1, C2), lambda n: (0, 0, 0)),
            pl.BlockSpec((S, HW, SSP), lambda n: (0, 0, 0)),
        ],
        out_specs=pl.BlockSpec((1, HW, Ccat), lambda n: (n, 0, 0)),
        compiler_params=pltpu.CompilerParams(
            dimension_semantics=("parallel",),
            vmem_limit_bytes=_VMEM_LIMIT_BYTES),
    )(x_flat, pool, w, b, m)


# ----------------------------------------------------------------------------
# Pallas kernel 2: bottleneck 3x3 conv (pad 1, no bias, BN scale folded in)
# + bias + ReLU.  Row-blocked, halo rows via clamped index_maps (no host pad),
# channel-chunked reduction with an f32 VMEM accumulator.
# ----------------------------------------------------------------------------
def _bottleneck_kernel(above_ref, x_ref, below_ref, w_ref, b_ref,
                       o_ref, acc_ref):
    _, R, W, CK = x_ref.shape        # block: (1, R, W, C_chunk)
    C2 = w_ref.shape[-1]
    hb = pl.program_id(1)
    kc = pl.program_id(2)
    nhb = pl.num_programs(1)
    nkc = pl.num_programs(2)

    @pl.when(kc == 0)
    def _():
        acc_ref[...] = jnp.zeros_like(acc_ref)

    # Halo rows: index_map clamps at the image border, so mask them to zero.
    top = above_ref[0, 0] * (hb > 0).astype(above_ref.dtype)
    bot = below_ref[0, 0] * (hb < nhb - 1).astype(below_ref.dtype)
    mid = x_ref[0]                                                  # (R, W, CK)
    ext = jnp.concatenate([top[None, :, :], mid, bot[None, :, :]], axis=0)
    zc = jnp.zeros((R + 2, 1, CK), ext.dtype)
    extp = jnp.concatenate([zc, ext, zc], axis=1)                   # (R+2, W+2, CK)

    acc = acc_ref[...]                                              # (R*W, C2) f32
    for dy in range(3):
        for dx in range(3):
            patch = extp[dy:dy + R, dx:dx + W, :].reshape(R * W, CK)
            acc = acc + jnp.dot(patch, w_ref[dy * 3 + dx],
                                preferred_element_type=jnp.float32)
    acc_ref[...] = acc

    @pl.when(kc == nkc - 1)
    def _():
        y = jnp.maximum(acc + b_ref[...], 0.0)                      # bias + ReLU
        o_ref[0] = y.reshape(R, W, C2).astype(o_ref.dtype)


def bottleneck_conv3x3(x_nhwc, w9, bn_b, rows_per_step=None):
    N, H, W, Ccat = x_nhwc.shape
    C2 = w9.shape[-1]

    if rows_per_step is None:
        # Target MXU M-dim of R*W ~= 512 rows (at least 8 rows per step).
        rows_per_step = max(8, -(-512 // W))
    R = min(rows_per_step, H)
    while H % R:                     # largest R <= rows_per_step dividing H
        R -= 1
    HB = H // R

    # Channel-reduction chunk (lane-aligned); fall back to full Ccat otherwise.
    CK = Ccat
    for cand in (512, 256, 128):
        if Ccat % cand == 0:
            CK = cand
            break
    NKC = Ccat // CK

    def above_map(n, hb, kc):
        return (n, jnp.maximum(hb * R - 1, 0), 0, kc)

    def main_map(n, hb, kc):
        return (n, hb, 0, kc)

    def below_map(n, hb, kc):
        return (n, jnp.minimum(hb * R + R, H - 1), 0, kc)

    return pl.pallas_call(
        _bottleneck_kernel,
        out_shape=jax.ShapeDtypeStruct((N, H, W, C2), jnp.float32),
        grid=(N, HB, NKC),
        in_specs=[
            pl.BlockSpec((1, 1, W, CK), above_map),     # halo row above
            pl.BlockSpec((1, R, W, CK), main_map),      # R body rows
            pl.BlockSpec((1, 1, W, CK), below_map),     # halo row below
            pl.BlockSpec((9, CK, C2), lambda n, hb, kc: (0, kc, 0)),
            pl.BlockSpec((1, C2), lambda n, hb, kc: (0, 0)),
        ],
        out_specs=pl.BlockSpec((1, R, W, C2), lambda n, hb, kc: (n, hb, 0, 0)),
        scratch_shapes=[pltpu.VMEM((R * W, C2), jnp.float32)],
        compiler_params=pltpu.CompilerParams(
            dimension_semantics=("parallel", "parallel", "arbitrary"),
            vmem_limit_bytes=_VMEM_LIMIT_BYTES),
    )(x_nhwc, x_nhwc, x_nhwc, w9, bn_b)


# ----------------------------------------------------------------------------
# PPM forward
# ----------------------------------------------------------------------------
def ppm_forward(x_nchw, params):
    N, C1, H, W = x_nchw.shape
    x_flat = (jnp.transpose(x_nchw, (0, 2, 3, 1))
              .reshape(N, H * W, C1)
              .astype(jnp.bfloat16))           # bf16 activations (halves HBM traffic)

    cat = fused_ppm_stages(x_flat, params)     # (N, HW, Ccat) bf16, torch concat order
    cat_nhwc = cat.reshape(N, H, W, -1)        # free reshape

    bp = params["bottleneck"]
    out_nhwc = bottleneck_conv3x3(cat_nhwc, bp["w"], bp["bn_b"])
    return jnp.transpose(out_nhwc, (0, 3, 1, 2))   # back to NCHW


# ----------------------------------------------------------------------------
# Deterministic synthetic parameter init (mirrors module __init__ shapes).
# BN scale is folded into the conv weights (inference mode).
# ----------------------------------------------------------------------------
def init_params(key, c1, c2, scales, H, W):
    S = len(scales)
    HW = H * W
    ss_max = max(s * s for s in scales)
    SSP = max(8, ((ss_max + 7) // 8) * 8)    # uniform padded pooled-pixel count

    pool_cat = np.zeros((S * SSP, HW), np.float32)
    interp_all = np.zeros((S, HW, SSP), np.float32)
    for k, s in enumerate(scales):
        ph = adaptive_avg_pool_matrix(H, s)
        pw = adaptive_avg_pool_matrix(W, s)
        pool_cat[k * SSP:k * SSP + s * s] = np.kron(ph, pw)
        mh = bicubic_matrix(H, s)
        mw = bicubic_matrix(W, s)
        interp_all[k, :, :s * s] = np.kron(mh, mw)   # zero cols for pad rows

    stage_w, stage_b = [], []
    for s in scales:
        key, k_w, k_g, k_b, k_m, k_v = jax.random.split(key, 6)
        w = jax.random.normal(k_w, (c1, c2), jnp.float32) / np.sqrt(c1)
        gamma = jax.random.uniform(k_g, (c2,), jnp.float32, 0.5, 1.5)
        beta = 0.1 * jax.random.normal(k_b, (c2,), jnp.float32)
        mean = 0.1 * jax.random.normal(k_m, (c2,), jnp.float32)
        var = jax.random.uniform(k_v, (c2,), jnp.float32, 0.5, 1.5)
        a, b = fold_bn(gamma, beta, mean, var)
        stage_w.append((w * a[None, :]).astype(jnp.bfloat16))   # fold BN scale
        stage_b.append(b.reshape(1, c2))

    params = dict(
        pool_cat=jnp.asarray(pool_cat).astype(jnp.bfloat16),    # (S*SSP, HW)
        interp_all=jnp.asarray(interp_all).astype(jnp.bfloat16),  # (S, HW, SSP)
        stage_w=jnp.stack(stage_w),                # (S, C1, C2) bf16
        stage_b=jnp.stack(stage_b),                # (S, 1, C2) f32
    )

    ccat = c1 + c2 * S
    key, k_w, k_g, k_b, k_m, k_v = jax.random.split(key, 6)
    w3 = jax.random.normal(k_w, (3, 3, ccat, c2), jnp.float32) / np.sqrt(9 * ccat)
    gamma = jax.random.uniform(k_g, (c2,), jnp.float32, 0.5, 1.5)
    beta = 0.1 * jax.random.normal(k_b, (c2,), jnp.float32)
    mean = 0.1 * jax.random.normal(k_m, (c2,), jnp.float32)
    var = jax.random.uniform(k_v, (c2,), jnp.float32, 0.5, 1.5)
    a, b = fold_bn(gamma, beta, mean, var)
    w3 = w3 * a[None, None, None, :]               # fold BN scale (f32, then bf16)
    params["bottleneck"] = dict(
        w=w3.reshape(9, ccat, c2).astype(jnp.bfloat16),  # tap k = dy*3+dx
        bn_b=b.reshape(1, c2))
    return params


if __name__ == "__main__":
    # Small but lane-dense config (module default c2=128; C1=128 keeps every
    # channel slice 128-aligned for unmasked vector stores).
    N, C1, H, W = 2, 128, 16, 16     # input x: (N, C1, H, W), NCHW like PyTorch
    C2 = 128
    scales = (1, 2, 3, 6)

    key = jax.random.PRNGKey(0)
    key, kx = jax.random.split(key)
    x = jax.random.normal(kx, (N, C1, H, W), jnp.float32)
    params = init_params(key, C1, C2, scales, H, W)

    out = ppm_forward(x, params)
    out = jax.block_until_ready(out)

    assert out.shape == (N, C2, H, W), out.shape
    assert bool(jnp.all(jnp.isfinite(out)))
    print("KERNEL_OK")
</pallas_src>

<mosaic_0001>
module attributes {stable_mosaic.version = 11 : i64} {
  func.func @_fused_stage_kernel(%arg0: i32, %arg1: memref<1x256x128xbf16, #tpu.memory_space<vmem>>, %arg2: memref<160x256xbf16, #tpu.memory_space<vmem>>, %arg3: memref<4x128x128xbf16, #tpu.memory_space<vmem>>, %arg4: memref<4x1x128xf32, #tpu.memory_space<vmem>>, %arg5: memref<4x256x40xbf16, #tpu.memory_space<vmem>>, %arg6: memref<1x256x640xbf16, #tpu.memory_space<vmem>>) attributes {dimension_semantics = [#tpu.dimension_semantics<parallel>], iteration_bounds = array<i64: 2>, scalar_prefetch = 0 : i64, scratch_operands = 0 : i64, tpu.core_type = #tpu.core_type<tc>, window_params = [{transform_indices = @transform_0, window_bounds = array<i64: 1, 256, 128>}, {pipeline_mode = #tpu.pipeline_mode<synchronous>, transform_indices = @transform_1, window_bounds = array<i64: 160, 256>}, {pipeline_mode = #tpu.pipeline_mode<synchronous>, transform_indices = @transform_2, window_bounds = array<i64: 4, 128, 128>}, {pipeline_mode = #tpu.pipeline_mode<synchronous>, transform_indices = @transform_3, window_bounds = array<i64: 4, 1, 128>}, {pipeline_mode = #tpu.pipeline_mode<synchronous>, transform_indices = @transform_4, window_bounds = array<i64: 4, 256, 40>}, {transform_indices = @transform_5, window_bounds = array<i64: 1, 256, 640>}]} {
    %c0 = arith.constant 0 : index
    %c0_0 = arith.constant 0 : index
    %c0_1 = arith.constant 0 : index
    %0 = vector.load %arg1[%c0, %c0_0, %c0_1] : memref<1x256x128xbf16, #tpu.memory_space<vmem>>, vector<1x256x128xbf16>
    %1 = vector.shape_cast %0 : vector<1x256x128xbf16> to vector<256x128xbf16>
    %c0_2 = arith.constant 0 : index
    %c0_3 = arith.constant 0 : index
    %2 = vector.load %arg2[%c0_2, %c0_3] : memref<160x256xbf16, #tpu.memory_space<vmem>>, vector<160x256xbf16>
    %cst = arith.constant dense<0.000000e+00> : vector<160x128xf32>
    %3 = tpu.matmul %2, %1, %cst {dimension_numbers = #tpu.dot_dimension_numbers<[1], [0], [0], [1], [0, 0, 1, 1], [], []>} : vector<160x256xbf16>, vector<256x128xbf16>, vector<160x128xf32> -> vector<160x128xf32>
    %c0_4 = arith.constant 0 : index
    %c0_5 = arith.constant 0 : index
    %c0_6 = arith.constant 0 : index
    %4 = vector.load %arg6[%c0_4, %c0_5, %c0_6] : memref<1x256x640xbf16, #tpu.memory_space<vmem>>, vector<1x256x128xbf16>
    %5 = vector.shape_cast %4 : vector<1x256x128xbf16> to vector<256x128xbf16>
    %6 = vector.shape_cast %1 : vector<256x128xbf16> to vector<1x256x128xbf16>
    tpu.vector_store %arg6[%c0_4, %c0_5, %c0_6], %6 {strides = array<i32>} : memref<1x256x640xbf16, #tpu.memory_space<vmem>>, vector<1x256x128xbf16>,
    %7 = vector.extract_strided_slice %3 {offsets = [0, 0], sizes = [40, 128], strides = [1, 1]} : vector<160x128xf32> to vector<40x128xf32>
    %8 = arith.truncf %7 : vector<40x128xf32> to vector<40x128xbf16>
    %c0_7 = arith.constant 0 : index
    %c0_8 = arith.constant 0 : index
    %c0_9 = arith.constant 0 : index
    %9 = vector.load %arg3[%c0_7, %c0_8, %c0_9] : memref<4x128x128xbf16, #tpu.memory_space<vmem>>, vector<1x128x128xbf16>
    %10 = vector.shape_cast %9 : vector<1x128x128xbf16> to vector<128x128xbf16>
    %cst_10 = arith.constant dense<0.000000e+00> : vector<40x128xf32>
    %11 = tpu.matmul %8, %10, %cst_10 {dimension_numbers = #tpu.dot_dimension_numbers<[1], [0], [0], [1], [0, 0, 1, 1], [], []>} : vector<40x128xbf16>, vector<128x128xbf16>, vector<40x128xf32> -> vector<40x128xf32>
    %c0_11 = arith.constant 0 : index
    %c0_12 = arith.constant 0 : index
    %c0_13 = arith.constant 0 : index
    %12 = vector.load %arg4[%c0_11, %c0_12, %c0_13] : memref<4x1x128xf32, #tpu.memory_space<vmem>>, vector<1x1x128xf32>
    %13 = vector.shape_cast %12 : vector<1x1x128xf32> to vector<1x128xf32>
    %14 = vector.broadcast %13 : vector<1x128xf32> to vector<40x128xf32>
    %15 = arith.addf %11, %14 : vector<40x128xf32>
    %cst_14 = arith.constant 0.000000e+00 : f32
    %16 = vector.broadcast %cst_14 : f32 to vector<40x128xf32>
    %17 = arith.maximumf %15, %16 : vector<40x128xf32>
    %c0_15 = arith.constant 0 : index
    %c0_16 = arith.constant 0 : index
    %c0_17 = arith.constant 0 : index
    %18 = vector.load %arg5[%c0_15, %c0_16, %c0_17] : memref<4x256x40xbf16, #tpu.memory_space<vmem>>, vector<1x256x40xbf16>
    %19 = vector.shape_cast %18 : vector<1x256x40xbf16> to vector<256x40xbf16>
    %20 = arith.truncf %17 : vector<40x128xf32> to vector<40x128xbf16>
    %cst_18 = arith.constant dense<0.000000e+00> : vector<256x128xf32>
    %21 = tpu.matmul %19, %20, %cst_18 {dimension_numbers = #tpu.dot_dimension_numbers<[1], [0], [0], [1], [0, 0, 1, 1], [], []>} : vector<256x40xbf16>, vector<40x128xbf16>, vector<256x128xf32> -> vector<256x128xf32>
    %22 = arith.truncf %21 : vector<256x128xf32> to vector<256x128xbf16>
    %c0_19 = arith.constant 0 : index
    %c0_20 = arith.constant 0 : index
    %c512 = arith.constant 512 : index
    %23 = vector.load %arg6[%c0_19, %c0_20, %c512] : memref<1x256x640xbf16, #tpu.memory_space<vmem>>, vector<1x256x128xbf16>
    %24 = vector.shape_cast %23 : vector<1x256x128xbf16> to vector<256x128xbf16>
    %25 = vector.shape_cast %22 : vector<256x128xbf16> to vector<1x256x128xbf16>
    tpu.vector_store %arg6[%c0_19, %c0_20, %c512], %25 {strides = array<i32>} : memref<1x256x640xbf16, #tpu.memory_space<vmem>>, vector<1x256x128xbf16>,
    %26 = vector.extract_strided_slice %3 {offsets = [40, 0], sizes = [40, 128], strides = [1, 1]} : vector<160x128xf32> to vector<40x128xf32>
    %27 = arith.truncf %26 : vector<40x128xf32> to vector<40x128xbf16>
    %c1 = arith.constant 1 : index
    %c0_21 = arith.constant 0 : index
    %c0_22 = arith.constant 0 : index
    %28 = vector.load %arg3[%c1, %c0_21, %c0_22] : memref<4x128x128xbf16, #tpu.memory_space<vmem>>, vector<1x128x128xbf16>
    %29 = vector.shape_cast %28 : vector<1x128x128xbf16> to vector<128x128xbf16>
    %cst_23 = arith.constant dense<0.000000e+00> : vector<40x128xf32>
    %30 = tpu.matmul %27, %29, %cst_23 {dimension_numbers = #tpu.dot_dimension_numbers<[1], [0], [0], [1], [0, 0, 1, 1], [], []>} : vector<40x128xbf16>, vector<128x128xbf16>, vector<40x128xf32> -> vector<40x128xf32>
    %c1_24 = arith.constant 1 : index
    %c0_25 = arith.constant 0 : index
    %c0_26 = arith.constant 0 : index
    %31 = vector.load %arg4[%c1_24, %c0_25, %c0_26] : memref<4x1x128xf32, #tpu.memory_space<vmem>>, vector<1x1x128xf32>
    %32 = vector.shape_cast %31 : vector<1x1x128xf32> to vector<1x128xf32>
    %33 = vector.broadcast %32 : vector<1x128xf32> to vector<40x128xf32>
    %34 = arith.addf %30, %33 : vector<40x128xf32>
    %cst_27 = arith.constant 0.000000e+00 : f32
    %35 = vector.broadcast %cst_27 : f32 to vector<40x128xf32>
    %36 = arith.maximumf %34, %35 : vector<40x128xf32>
    %c1_28 = arith.constant 1 : index
    %c0_29 = arith.constant 0 : index
    %c0_30 = arith.constant 0 : index
    %37 = vector.load %arg5[%c1_28, %c0_29, %c0_30] : memref<4x256x40xbf16, #tpu.memory_space<vmem>>, vector<1x256x40xbf16>
    %38 = vector.shape_cast %37 : vector<1x256x40xbf16> to vector<256x40xbf16>
    %39 = arith.truncf %36 : vector<40x128xf32> to vector<40x128xbf16>
    %cst_31 = arith.constant dense<0.000000e+00> : vector<256x128xf32>
    %40 = tpu.matmul %38, %39, %cst_31 {dimension_numbers = #tpu.dot_dimension_numbers<[1], [0], [0], [1], [0, 0, 1, 1], [], []>} : vector<256x40xbf16>, vector<40x128xbf16>, vector<256x128xf32> -> vector<256x128xf32>
    %41 = arith.truncf %40 : vector<256x128xf32> to vector<256x128xbf16>
    %c0_32 = arith.constant 0 : index
    %c0_33 = arith.constant 0 : index
    %c384 = arith.constant 384 : index
    %42 = vector.load %arg6[%c0_32, %c0_33, %c384] : memref<1x256x640xbf16, #tpu.memory_space<vmem>>, vector<1x256x128xbf16>
    %43 = vector.shape_cast %42 : vector<1x256x128xbf16> to vector<256x128xbf16>
    %44 = vector.shape_cast %41 : vector<256x128xbf16> to vector<1x256x128xbf16>
    tpu.vector_store %arg6[%c0_32, %c0_33, %c384], %44 {strides = array<i32>} : memref<1x256x640xbf16, #tpu.memory_space<vmem>>, vector<1x256x128xbf16>,
    %45 = vector.extract_strided_slice %3 {offsets = [80, 0], sizes = [40, 128], strides = [1, 1]} : vector<160x128xf32> to vector<40x128xf32>
    %46 = arith.truncf %45 : vector<40x128xf32> to vector<40x128xbf16>
    %c2 = arith.constant 2 : index
    %c0_34 = arith.constant 0 : index
    %c0_35 = arith.constant 0 : index
    %47 = vector.load %arg3[%c2, %c0_34, %c0_35] : memref<4x128x128xbf16, #tpu.memory_space<vmem>>, vector<1x128x128xbf16>
    %48 = vector.shape_cast %47 : vector<1x128x128xbf16> to vector<128x128xbf16>
    %cst_36 = arith.constant dense<0.000000e+00> : vector<40x128xf32>
    %49 = tpu.matmul %46, %48, %cst_36 {dimension_numbers = #tpu.dot_dimension_numbers<[1], [0], [0], [1], [0, 0, 1, 1], [], []>} : vector<40x128xbf16>, vector<128x128xbf16>, vector<40x128xf32> -> vector<40x128xf32>
    %c2_37 = arith.constant 2 : index
    %c0_38 = arith.constant 0 : index
    %c0_39 = arith.constant 0 : index
    %50 = vector.load %arg4[%c2_37, %c0_38, %c0_39] : memref<4x1x128xf32, #tpu.memory_space<vmem>>, vector<1x1x128xf32>
    %51 = vector.shape_cast %50 : vector<1x1x128xf32> to vector<1x128xf32>
    %52 = vector.broadcast %51 : vector<1x128xf32> to vector<40x128xf32>
    %53 = arith.addf %49, %52 : vector<40x128xf32>
    %cst_40 = arith.constant 0.000000e+00 : f32
    %54 = vector.broadcast %cst_40 : f32 to vector<40x128xf32>
    %55 = arith.maximumf %53, %54 : vector<40x128xf32>
    %c2_41 = arith.constant 2 : index
    %c0_42 = arith.constant 0 : index
    %c0_43 = arith.constant 0 : index
    %56 = vector.load %arg5[%c2_41, %c0_42, %c0_43] : memref<4x256x40xbf16, #tpu.memory_space<vmem>>, vector<1x256x40xbf16>
    %57 = vector.shape_cast %56 : vector<1x256x40xbf16> to vector<256x40xbf16>
    %58 = arith.truncf %55 : vector<40x128xf32> to vector<40x128xbf16>
    %cst_44 = arith.constant dense<0.000000e+00> : vector<256x128xf32>
    %59 = tpu.matmul %57, %58, %cst_44 {dimension_numbers = #tpu.dot_dimension_numbers<[1], [0], [0], [1], [0, 0, 1, 1], [], []>} : vector<256x40xbf16>, vector<40x128xbf16>, vector<256x128xf32> -> vector<256x128xf32>
    %60 = arith.truncf %59 : vector<256x128xf32> to vector<256x128xbf16>
    %c0_45 = arith.constant 0 : index
    %c0_46 = arith.constant 0 : index
    %c256 = arith.constant 256 : index
    %61 = vector.load %arg6[%c0_45, %c0_46, %c256] : memref<1x256x640xbf16, #tpu.memory_space<vmem>>, vector<1x256x128xbf16>
    %62 = vector.shape_cast %61 : vector<1x256x128xbf16> to vector<256x128xbf16>
    %63 = vector.shape_cast %60 : vector<256x128xbf16> to vector<1x256x128xbf16>
    tpu.vector_store %arg6[%c0_45, %c0_46, %c256], %63 {strides = array<i32>} : memref<1x256x640xbf16, #tpu.memory_space<vmem>>, vector<1x256x128xbf16>,
    %64 = vector.extract_strided_slice %3 {offsets = [120, 0], sizes = [40, 128], strides = [1, 1]} : vector<160x128xf32> to vector<40x128xf32>
    %65 = arith.truncf %64 : vector<40x128xf32> to vector<40x128xbf16>
    %c3 = arith.constant 3 : index
    %c0_47 = arith.constant 0 : index
    %c0_48 = arith.constant 0 : index
    %66 = vector.load %arg3[%c3, %c0_47, %c0_48] : memref<4x128x128xbf16, #tpu.memory_space<vmem>>, vector<1x128x128xbf16>
    %67 = vector.shape_cast %66 : vector<1x128x128xbf16> to vector<128x128xbf16>
    %cst_49 = arith.constant dense<0.000000e+00> : vector<40x128xf32>
    %68 = tpu.matmul %65, %67, %cst_49 {dimension_numbers = #tpu.dot_dimension_numbers<[1], [0], [0], [1], [0, 0, 1, 1], [], []>} : vector<40x128xbf16>, vector<128x128xbf16>, vector<40x128xf32> -> vector<40x128xf32>
    %c3_50 = arith.constant 3 : index
    %c0_51 = arith.constant 0 : index
    %c0_52 = arith.constant 0 : index
    %69 = vector.load %arg4[%c3_50, %c0_51, %c0_52] : memref<4x1x128xf32, #tpu.memory_space<vmem>>, vector<1x1x128xf32>
    %70 = vector.shape_cast %69 : vector<1x1x128xf32> to vector<1x128xf32>
    %71 = vector.broadcast %70 : vector<1x128xf32> to vector<40x128xf32>
    %72 = arith.addf %68, %71 : vector<40x128xf32>
    %cst_53 = arith.constant 0.000000e+00 : f32
    %73 = vector.broadcast %cst_53 : f32 to vector<40x128xf32>
    %74 = arith.maximumf %72, %73 : vector<40x128xf32>
    %c3_54 = arith.constant 3 : index
    %c0_55 = arith.constant 0 : index
    %c0_56 = arith.constant 0 : index
    %75 = vector.load %arg5[%c3_54, %c0_55, %c0_56] : memref<4x256x40xbf16, #tpu.memory_space<vmem>>, vector<1x256x40xbf16>
    %76 = vector.shape_cast %75 : vector<1x256x40xbf16> to vector<256x40xbf16>
    %77 = arith.truncf %74 : vector<40x128xf32> to vector<40x128xbf16>
    %cst_57 = arith.constant dense<0.000000e+00> : vector<256x128xf32>
    %78 = tpu.matmul %76, %77, %cst_57 {dimension_numbers = #tpu.dot_dimension_numbers<[1], [0], [0], [1], [0, 0, 1, 1], [], []>} : vector<256x40xbf16>, vector<40x128xbf16>, vector<256x128xf32> -> vector<256x128xf32>
    %79 = arith.truncf %78 : vector<256x128xf32> to vector<256x128xbf16>
    %c0_58 = arith.constant 0 : index
    %c0_59 = arith.constant 0 : index
    %c128 = arith.constant 128 : index
    %80 = vector.load %arg6[%c0_58, %c0_59, %c128] : memref<1x256x640xbf16, #tpu.memory_space<vmem>>, vector<1x256x128xbf16>
    %81 = vector.shape_cast %80 : vector<1x256x128xbf16> to vector<256x128xbf16>
    %82 = vector.shape_cast %79 : vector<256x128xbf16> to vector<1x256x128xbf16>
    tpu.vector_store %arg6[%c0_58, %c0_59, %c128], %82 {strides = array<i32>} : memref<1x256x640xbf16, #tpu.memory_space<vmem>>, vector<1x256x128xbf16>,
    return
  }
  func.func @transform_0(%arg0: i32) -> (i32, i32, i32) {
    %c0_i32 = arith.constant 0 : i32
    %c0_i32_0 = arith.constant 0 : i32
    %c0_i32_1 = arith.constant 0 : i32
    return %arg0, %c0_i32, %c0_i32_0 : i32, i32, i32
  }
  func.func @transform_1(%arg0: i32) -> (i32, i32) {
    %c0_i32 = arith.constant 0 : i32
    %c0_i32_0 = arith.constant 0 : i32
    %c0_i32_1 = arith.constant 0 : i32
    return %c0_i32, %c0_i32_0 : i32, i32
  }
  func.func @transform_2(%arg0: i32) -> (i32, i32, i32) {
    %c0_i32 = arith.constant 0 : i32
    %c0_i32_0 = arith.constant 0 : i32
    %c0_i32_1 = arith.constant 0 : i32
    %c0_i32_2 = arith.constant 0 : i32
    return %c0_i32, %c0_i32_0, %c0_i32_1 : i32, i32, i32
  }
  func.func @transform_3(%arg0: i32) -> (i32, i32, i32) {
    %c0_i32 = arith.constant 0 : i32
    %c0_i32_0 = arith.constant 0 : i32
    %c0_i32_1 = arith.constant 0 : i32
    %c0_i32_2 = arith.constant 0 : i32
    return %c0_i32, %c0_i32_0, %c0_i32_1 : i32, i32, i32
  }
  func.func @transform_4(%arg0: i32) -> (i32, i32, i32) {
    %c0_i32 = arith.constant 0 : i32
    %c0_i32_0 = arith.constant 0 : i32
    %c0_i32_1 = arith.constant 0 : i32
    %c0_i32_2 = arith.constant 0 : i32
    return %c0_i32, %c0_i32_0, %c0_i32_1 : i32, i32, i32
  }
  func.func @transform_5(%arg0: i32) -> (i32, i32, i32) {
    %c0_i32 = arith.constant 0 : i32
    %c0_i32_0 = arith.constant 0 : i32
    %c0_i32_1 = arith.constant 0 : i32
    return %arg0, %c0_i32, %c0_i32_0 : i32, i32, i32
  }
}

</mosaic_0001>

<bundles_post_ra>
// kernel: tpu_custom_call.1
= control target key start
LH: loop header
LB: loop body
LE: loop exit
PB: predicated region body
PF: predicated region fallthrough
CT: control target
= control target key end

     0   :  { %10 = vsyncpa [#allocation3], 0  ;;  %s5466_s0 = inlined_call_operand.vmem [shape: bf16[2,256,128], index: 0, kind: input, shape index: {}]   ;;  %s5467_s1 = inlined_call_operand.vmem [shape: bf16[160,256], index: 1, kind: input, shape index: {}]   ;;  %s5468_s2 = inlined_call_operand.vmem [shape: bf16[4,128,128], index: 2, kind: input, shape index: {}]   ;;  %s5469_s3 = inlined_call_operand.vmem [shape: f32[4,1,128], index: 3, kind: input, shape index: {}]   ;;  %s5470_s4 = inlined_call_operand.vmem [shape: bf16[4,256,40], index: 4, kind: input, shape index: {}]   ;;  %s5471_s5 = inlined_call_operand.hbm [shape: bf16[2,256,640], index: 5, kind: output, shape index: {}]  }
   0x1   :  { %12 = vsyncpa [#allocation3 + $0x1], 0  ;;  %s4578_s18 = smov 0   ;;  %s4580_s19 = smov 0  }
   0x2   :  { %s4582_s20 = smov 0   ;;  %s4584_s21 = smov 0  }
   0x3 LB: > { %s4599_s22 = sadd.s32 4294967295, %s4541_s21   ;;  %s3192_s23 = sadd.s32 4294967294, %s4541_s21   ;;  %s4541_s21 = sphi %s4584_s21, %s5477_s21   ;;  %s4537_s20 = sphi %s4582_s20, %s5476_s20   ;;  %s4533_s19 = sphi %s4580_s19, %s5475_s19   ;;  %s4529_s18 = sphi %s4578_s18, %s5474_s18  }
   0x4   : > { %s4603_s24 = sadd.s32 1, %s4541_s21   ;;  %s135_s25 = sadd.s32 1, %s4537_s20 }
   0x5   : > { %s132_s26 = ssub.s32 %s4541_s21, %s4603_s24  ;;  %p145_p0 = scmp.ne.s32.totalorder %s4537_s20, %s4533_s19 }
   0x6   : > { %p133_p1 = scmp.eq.s32.totalorder %s132_s26, 0  ;;  %p146_p2 = scmp.eq.s32.totalorder %s4599_s22, 1 }
   0x7   : > { %p151_p3 = scmp.ne.s32.totalorder %s4533_s19, %s4529_s18  ;;  %p152_p4 = scmp.eq.s32.totalorder %s3192_s23, 1 }
   0x8   : > { %s4614_s27 = scalar_select %p133_p1, %s4537_s20, %s135_s25  }
   0x9   : > { %p4616_p5 = por %p146_p2, %p145_p0  ;;  %p4620_p6 = por %p152_p4, %p151_p3 }
   0xa   : > { %p3195_p7 = scmp.ge.s32.totalorder %s4541_s21, 1  ;;  %p190_p8 = scmp.lt.s32.totalorder %s4541_s21, 3 }
   0xc   : > { %p191_p9 = pnand %p3195_p7, %p190_p8 }
   0xd   : > { %s215_s30 = sand.u32 (!%p191_p9), 1, %s4533_s19   ;;  %p218_p10 = scmp.lt.s32.totalorder (!%p191_p9), %s4599_s22, 1  ;;  %v4355_v0 = vld [vmem:[%s5467_s1 + $0x4] ss:$8 sps:$4 sm:$0xff] (!%p191_p9)   ;;  %v4543_v1 = vmov (!%p191_p9), 0.0   ;;  %v4370_v46 = vld [vmem:[%s5468_s2 + $0x10] sm:$0xff] (!%p191_p9)  }
   0xe   : > { %194 = sbr.rel (%p191_p9) target bundleno = 1362 (0x552), region = 40  ;;  %4001 = vmatprep.subr.bf16.mxu1 (!%p191_p9), %v4543_v1  ;;  %504 = vmatprep.mubr.bf16.mxu0 (!%p191_p9), %v4355_v0  ;;  %v4365_v41 = vld [vmem:[%s5468_s2] sm:$0xff] (!%p191_p9)   ;;  %v4368_v43 = vld [vmem:[%s5468_s2 + $0x8] sm:$0xff] (!%p191_p9)   ;;  %v4373_v49 = vld [vmem:[%s5468_s2 + $0x18] sm:$0xff] (!%p191_p9)   ;;  %vm4544_vm0 = vmmov (!%p191_p9), 0   ;;  %vm867_vm1 = vcmask (!%p191_p9), 326656  }
   0xf   : > { %s4292_s6 = smul.u32 (!%p191_p9), 640, %s215_s30  ;;  %4002 = vmatpush3.bf16.msra.mxu1 (!%p191_p9), %v4365_v41  ;;  %v4375_v51 = vld [vmem:[%s5468_s2 + $0x20] sm:$0xff] (!%p191_p9)   ;;  %v4378_v54 = vld [vmem:[%s5468_s2 + $0x28] sm:$0xff] (!%p191_p9)   ;;  %v4356_v57 = vld [vmem:[%s5467_s1 + $0x14] ss:$8 sps:$4 sm:$0xff] (!%p191_p9)   ;;  %4017 = vmatprep.mubr.msk.bf16.mxu1 (!%p191_p9), %vm4544_vm0, %v4543_v1  ;;  %vm916_vm2 = vcmask (!%p191_p9), 1043456  }
  0x10   : > { %4003 = vmatprep.subr.bf16.mxu1 (!%p191_p9), %v4543_v1  ;;  %v4353_v56 = vld [vmem:[%s5467_s1] ss:$8 sps:$4 sm:$0xff] (!%p191_p9)   ;;  %v4358_v59 = vld [vmem:[%s5467_s1 + $0x10] ss:$8 sps:$4 sm:$0xff] (!%p191_p9)   ;;  %v4359_v60 = vld [vmem:[%s5467_s1 + $0x24] ss:$8 sps:$4 sm:$0xff] (!%p191_p9)  }
  0x11   : > { %s4643_s14 = scalar_lea.vmem (!%p191_p9), [#allocation2], %s4292_s6  ;;  %v4738_v58 = vld [vmem:[%s5468_s2 + $0x40] sm:$0xff] (!%p191_p9)   ;;  %v4362_v62 = vld [vmem:[%s5467_s1 + $0x34] ss:$8 sps:$4 sm:$0xff] (!%p191_p9)   ;;  %v4364_v63 = vld [vmem:[%s5467_s1 + $0x30] ss:$8 sps:$4 sm:$0xff] (!%p191_p9)  }
  0x12   : > { %v4361_v61 = vld [vmem:[%s5467_s1 + $0x20] ss:$8 sps:$4 sm:$0xff] (!%p191_p9)   ;;  %v4366_v0 = vld [vmem:[%s5467_s1 + $0x44] ss:$8 sps:$4 sm:$0xff] (!%p191_p9)   ;;  %s4293_s15 = smul.u32 (!%p191_p9), 10240, %s4599_s22  ;;  %s3130_s16 = sshll.u32 (!%p191_p9), %s4643_s14, 4  ;;  %s5415_s16 = int_to_ptr.vmem [resolvable:$true] %s3130_s16 }
  0x13   : > { %4004 = vmatpush3.bf16.msra.mxu1 (!%p191_p9), %v4368_v43  ;;  %s5425_s25 = scalar_lea.sflag (!%p191_p9), [#allocation3], %s215_s30  ;;  %s4479_s26 = scalar_lea.vmem (!%p191_p9), %s5415_s16, 10240 }
  0x14   : > { %4005 = vmatprep.subr.bf16.mxu1 (!%p191_p9), %v4543_v1  ;;  %s5413_s23 = scalar_lea.hbm (!%p191_p9), %s5471_s5, %s4293_s15  ;;  %p4480_p11 = scmp.ne.s32.totalorder (!%p191_p9), %s5415_s16, %s4479_s26 }
  0x15   : > { %s219_s9 = scalar_select %p218_p10, %s4599_s22, 1 }
  0x16   : > { %p4481_p12 = pnand %p4480_p11, %p4616_p5  ;;  %s4545_s6 = smov [#allocation2]  }
  0x17   : > { %s3676_s10 = sshll.u32 %s219_s9, 7  ;;  %4006 = vmatpush3.bf16.msra.mxu1 %v4370_v46  ;;  %s4483_s7 = sshll.u32 %s4545_s6, 4  ;;  %s4484_s7 = int_to_ptr.vmem [resolvable:$false] %s4483_s7 }
  0x18   : > { %s4638_s13 = scalar_lea.vmem %s5466_s0, %s3676_s10  ;;  %4007 = vmatprep.subr.bf16.mxu1 %v4543_v1  ;;  %p4482_p13 = pneg %p4481_p12 }
  0x19   : > { %v240_v2 = vld [vmem:[%s4638_s13 + $0x40] sm:$0xf]  ;;  %v241_v3 = vld [vmem:[%s4638_s13 + $0x44] sm:$0xf]  ;;  %v242_v7 = vld [vmem:[%s4638_s13 + $0x48] sm:$0xf]  ;;  %p4486_p0 = scmp.lt.s32.totalorder %s5415_s16, %s4484_s7 }
  0x1a   : > { %v224_v4 = vld [vmem:[%s4638_s13] sm:$0xf]  ;;  %v3226_v5 = vcombine.low %v240_v2, %v241_v3  ;;  %601 = vst [vmem:[%s4643_s14 + $0x140] sm:$0xf] %v240_v2  ;;  %602 = vst [vmem:[%s4643_s14 + $0x154] sm:$0xf] %v241_v3 }
  0x1b   : > { %v225_v6 = vld [vmem:[%s4638_s13 + $0x4] sm:$0xf]  ;;  %585 = vst [vmem:[%s4643_s14] sm:$0xf] %v224_v4  ;;  %v243_v8 = vld [vmem:[%s4638_s13 + $0x4c] sm:$0xf]  ;;  %4008 = vmatpush3.bf16.msra.mxu1 %v4373_v49  ;;  %s4485_s8 = scalar_lea.vmem %s4484_s7, 20480 }
  0x1c   : > { %v3218_v9 = vcombine.low %v224_v4, %v225_v6  ;;  %586 = vst [vmem:[%s4643_s14 + $0x14] sm:$0xf] %v225_v6  ;;  %v3227_v10 = vcombine.low %v242_v7, %v243_v8  ;;  %603 = vst [vmem:[%s4643_s14 + $0x168] sm:$0xf] %v242_v7  ;;  %v226_v11 = vld [vmem:[%s4638_s13 + $0x8] sm:$0xf]  ;;  %3805 = vmatprep.subr.bf16.mxu0 %v3226_v5  ;;  %4009 = vmatprep.subr.bf16.mxu1 %v4543_v1  ;;  %p4487_p1 = scmp.lt.s32.totalorder %s4485_s8, %s4479_s26 }
  0x1d   : > { %604 = vst [vmem:[%s4643_s14 + $0x17c] sm:$0xf] %v243_v8  ;;  %v227_v12 = vld [vmem:[%s4638_s13 + $0xc] sm:$0xf]  ;;  %v244_v13 = vld [vmem:[%s4638_s13 + $0x50] sm:$0xf] }
  0x1e   : > { %587 = vst [vmem:[%s4643_s14 + $0x28] sm:$0xf] %v226_v11  ;;  %588 = vst [vmem:[%s4643_s14 + $0x3c] sm:$0xf] %v227_v12  ;;  %v245_v14 = vld [vmem:[%s4638_s13 + $0x54] sm:$0xf]  ;;  %3806 = vmatpush3.bf16.msra.mxu0 %v3218_v9  ;;  %v3219_v17 = vcombine.low %v226_v11, %v227_v12  ;;  %p4488_p2 = por %p4487_p1, %p4486_p0 }
  0x1f   : > { %605 = vst [vmem:[%s4643_s14 + $0x190] sm:$0xf] %v244_v13  ;;  %v228_v15 = vld [vmem:[%s4638_s13 + $0x10] sm:$0xf]  ;;  %v229_v16 = vld [vmem:[%s4638_s13 + $0x14] sm:$0xf]  ;;  %3807 = vmatprep.subr.bf16.mxu0 %v3227_v10  ;;  %v3228_v21 = vcombine.low %v244_v13, %v245_v14  ;;  %4010 = vmatpush3.bf16.msra.mxu1 %v4375_v51 }
  0x20   : > { %606 = vst [vmem:[%s4643_s14 + $0x1a4] sm:$0xf] %v245_v14  ;;  %589 = vst [vmem:[%s4643_s14 + $0x50] sm:$0xf] %v228_v15  ;;  %v246_v18 = vld [vmem:[%s4638_s13 + $0x58] sm:$0xf]  ;;  %v3220_v31 = vcombine.low %v228_v15, %v229_v16  ;;  %4011 = vmatprep.subr.bf16.mxu1 %v4543_v1  ;;  %p4489_p3 = pnand %p4488_p2, %p4482_p13 }
  0x21   : > { %590 = vst [vmem:[%s4643_s14 + $0x64] sm:$0xf] %v229_v16  ;;  %v247_v19 = vld [vmem:[%s4638_s13 + $0x5c] sm:$0xf]  ;;  %v230_v20 = vld [vmem:[%s4638_s13 + $0x18] sm:$0xf] }
  0x22   : > { %607 = vst [vmem:[%s4643_s14 + $0x1b8] sm:$0xf] %v246_v18  ;;  %608 = vst [vmem:[%s4643_s14 + $0x1cc] sm:$0xf] %v247_v19  ;;  %v231_v22 = vld [vmem:[%s4638_s13 + $0x1c] sm:$0xf]  ;;  %3808 = vmatpush3.bf16.msra.mxu0 %v3219_v17  ;;  %v3229_v35 = vcombine.low %v246_v18, %v247_v19 }
  0x23   : > { %591 = vst [vmem:[%s4643_s14 + $0x78] sm:$0xf] %v230_v20  ;;  %v248_v23 = vld [vmem:[%s4638_s13 + $0x60] sm:$0xf]  ;;  %v249_v24 = vld [vmem:[%s4638_s13 + $0x64] sm:$0xf]  ;;  %3809 = vmatprep.subr.bf16.mxu0 %v3228_v21  ;;  %v3221_v42 = vcombine.low %v230_v20, %v231_v22  ;;  %4012 = vmatpush3.bf16.msra.mxu1 %v4378_v54 }
  0x24   : > { %592 = vst [vmem:[%s4643_s14 + $0x8c] sm:$0xf] %v231_v22  ;;  %609 = vst [vmem:[%s4643_s14 + $0x1e0] sm:$0xf] %v248_v23  ;;  %v232_v25 = vld [vmem:[%s4638_s13 + $0x20] sm:$0xf]  ;;  %v3230_v44 = vcombine.low %v248_v23, %v249_v24  ;;  %4013 = vmatprep.subr.bf16.mxu1 %v4543_v1 }
  0x25   : > { %610 = vst [vmem:[%s4643_s14 + $0x1f4] sm:$0xf] %v249_v24  ;;  %v233_v26 = vld [vmem:[%s4638_s13 + $0x24] sm:$0xf]  ;;  %v250_v27 = vld [vmem:[%s4638_s13 + $0x68] sm:$0xf] }
  0x26   : > { %593 = vst [vmem:[%s4643_s14 + $0xa0] sm:$0xf] %v232_v25  ;;  %594 = vst [vmem:[%s4643_s14 + $0xb4] sm:$0xf] %v233_v26  ;;  %v251_v28 = vld [vmem:[%s4638_s13 + $0x6c] sm:$0xf]  ;;  %3810 = vmatpush3.bf16.msra.mxu0 %v3220_v31  ;;  %v3222_v45 = vcombine.low %v232_v25, %v233_v26 }
  0x27   : > { %611 = vst [vmem:[%s4643_s14 + $0x208] sm:$0xf] %v250_v27  ;;  %v234_v29 = vld [vmem:[%s4638_s13 + $0x28] sm:$0xf]  ;;  %v235_v30 = vld [vmem:[%s4638_s13 + $0x2c] sm:$0xf]  ;;  %3811 = vmatprep.subr.bf16.mxu0 %v3229_v35  ;;  %v3231_v47 = vcombine.low %v250_v27, %v251_v28 }
  0x28   : > { %612 = vst [vmem:[%s4643_s14 + $0x21c] sm:$0xf] %v251_v28  ;;  %595 = vst [vmem:[%s4643_s14 + $0xc8] sm:$0xf] %v234_v29  ;;  %v252_v32 = vld [vmem:[%s4638_s13 + $0x70] sm:$0xf]  ;;  %v3223_v48 = vcombine.low %v234_v29, %v235_v30 }
  0x29   : > { %596 = vst [vmem:[%s4643_s14 + $0xdc] sm:$0xf] %v235_v30  ;;  %v253_v33 = vld [vmem:[%s4638_s13 + $0x74] sm:$0xf]  ;;  %v236_v34 = vld [vmem:[%s4638_s13 + $0x30] sm:$0xf] }
  0x2a   : > { %613 = vst [vmem:[%s4643_s14 + $0x230] sm:$0xf] %v252_v32  ;;  %614 = vst [vmem:[%s4643_s14 + $0x244] sm:$0xf] %v253_v33  ;;  %v237_v36 = vld [vmem:[%s4638_s13 + $0x34] sm:$0xf]  ;;  %3812 = vmatpush3.bf16.msra.mxu0 %v3221_v42  ;;  %v3232_v50 = vcombine.low %v252_v32, %v253_v33 }
  0x2b   : > { %597 = vst [vmem:[%s4643_s14 + $0xf0] sm:$0xf] %v236_v34  ;;  %v254_v37 = vld [vmem:[%s4638_s13 + $0x78] sm:$0xf]  ;;  %v255_v38 = vld [vmem:[%s4638_s13 + $0x7c] sm:$0xf]  ;;  %3813 = vmatprep.subr.bf16.mxu0 %v3230_v44  ;;  %v3224_v52 = vcombine.low %v236_v34, %v237_v36 }
  0x2c   : > { %598 = vst [vmem:[%s4643_s14 + $0x104] sm:$0xf] %v237_v36  ;;  %615 = vst [vmem:[%s4643_s14 + $0x258] sm:$0xf] %v254_v37  ;;  %v238_v39 = vld [vmem:[%s4638_s13 + $0x38] sm:$0xf]  ;;  %v3233_v53 = vcombine.low %v254_v37, %v255_v38 }
  0x2d   : > { %616 = vst [vmem:[%s4643_s14 + $0x26c] sm:$0xf] %v255_v38  ;;  %v239_v40 = vld [vmem:[%s4638_s13 + $0x3c] sm:$0xf]  ;;  %599 = vst [vmem:[%s4643_s14 + $0x118] sm:$0xf] %v238_v39 }
  0x2e   : > { %600 = vst [vmem:[%s4643_s14 + $0x12c] sm:$0xf] %v239_v40  ;;  %3814 = vmatpush3.bf16.msra.mxu0 %v3222_v45  ;;  %v3225_v55 = vcombine.low %v238_v39, %v239_v40  ;;  %v4369_v2 = vld [vmem:[%s5467_s1 + $0x40] ss:$8 sps:$4 sm:$0xff]   ;;  %v4371_v3 = vld [vmem:[%s5467_s1 + $0x54] ss:$8 sps:$4 sm:$0xff]  }
  0x2f   : > { %3815 = vmatprep.subr.bf16.mxu0 %v3231_v47  ;;  %v4374_v4 = vld [vmem:[%s5467_s1 + $0x50] ss:$8 sps:$4 sm:$0xff]   ;;  %v4376_v5 = vld [vmem:[%s5467_s1 + $0x64] ss:$8 sps:$4 sm:$0xff]   ;;  %v4379_v6 = vld [vmem:[%s5467_s1 + $0x60] ss:$8 sps:$4 sm:$0xff]  }
  0x30   : > { %v4381_v7 = vld [vmem:[%s5468_s2 + $0x30] sm:$0xff]   ;;  %v4783_v8 = vld [vmem:[%s5468_s2 + $0x48] sm:$0xff]   ;;  %v4385_v10 = vld [vmem:[%s5468_s2 + $0x38] sm:$0xff]  }
  0x31   : > { %4014 = vmatpush3.bf16.msra.mxu1 %v4381_v7  ;;  %v4383_v9 = vld [vmem:[%s5467_s1 + $0x74] ss:$8 sps:$4 sm:$0xff]   ;;  %v4386_v11 = vld [vmem:[%s5467_s1 + $0x70] ss:$8 sps:$4 sm:$0xff]   ;;  %v4389_v14 = vld [vmem:[%s5467_s1 + $0x84] ss:$8 sps:$4 sm:$0xff]  }
  0x32   : > { %3816 = vmatpush3.bf16.msra.mxu0 %v3223_v48  ;;  %4015 = vmatprep.subr.bf16.mxu1 %v4543_v1  ;;  %v4800_v12 = vld [vmem:[%s5468_s2 + $0x50] sm:$0xff]   ;;  %v4809_v13 = vld [vmem:[%s5468_s2 + $0x58] sm:$0xff]   ;;  %v4391_v15 = vld [vmem:[%s5467_s1 + $0x80] ss:$8 sps:$4 sm:$0xff]  }
  0x33   : > { %3817 = vmatprep.subr.bf16.mxu0 %v3232_v50  ;;  %v4822_v16 = vld [vmem:[%s5468_s2 + $0x60] sm:$0xff]   ;;  %v4829_v17 = vld [vmem:[%s5468_s2 + $0x68] sm:$0xff]   ;;  %v4394_v18 = vld [vmem:[%s5467_s1 + $0x94] ss:$8 sps:$4 sm:$0xff]  }
  0x34   : > { %v4396_v19 = vld [vmem:[%s5467_s1 + $0x90] ss:$8 sps:$4 sm:$0xff]  }
  0x35   : > { %4016 = vmatpush3.bf16.msra.mxu1 %v4385_v10  ;;  %v4842_v20 = vld [vmem:[%s5468_s2 + $0x70] sm:$0xff]   ;;  %v4851_v21 = vld [vmem:[%s5468_s2 + $0x78] sm:$0xff]  }
  0x36   : > { %3818 = vmatpush3.bf16.msra.mxu0 %v3224_v52 }
  0x37   : > { %3819 = vmatprep.subr.bf16.mxu0 %v3233_v53 }
  0x3a   : > { %3820 = vmatpush3.bf16.msra.mxu0 %v3225_v55 }
  0x3b   : > { %4067 = vmatprep.subr.bf16.mxu0 %v4543_v1 }
  0x3d   : > { %505 = vmatmul.mubr.bf16.vlgmr.msra.gmra.mrb[0].mxu0 %v4353_v56 }
  0x3e   : > { %512 = vmatprep.mubr.bf16.mxu0 %v4356_v57  ;;  %4068 = vmatpush3.bf16.msra.mxu0 %v4738_v58 }
  0x3f   : > { %4069 = vmatprep.subr.bf16.mxu0 %v4543_v1 }
  0x42   : > { %4070 = vmatpush3.bf16.msra.mxu0 %v4783_v8 }
  0x43   : > { %4071 = vmatprep.subr.bf16.mxu0 %v4543_v1 }
  0x45   : > { %513 = vmatmul.mubr.bf16.gmra.mrb[4].mxu0 %v4358_v59 }
  0x46   : > { %520 = vmatprep.mubr.bf16.mxu0 %v4359_v60  ;;  %4072 = vmatpush3.bf16.msra.mxu0 %v4800_v12 }
  0x47   : > { %4073 = vmatprep.subr.bf16.mxu0 %v4543_v1 }
  0x4a   : > { %4074 = vmatpush3.bf16.msra.mxu0 %v4809_v13 }
  0x4b   : > { %4075 = vmatprep.subr.bf16.mxu0 %v4543_v1 }
  0x4d   : > { %521 = vmatmul.mubr.bf16.gmra.mrb[8].mxu0 %v4361_v61 }
  0x4e   : > { %528 = vmatprep.mubr.bf16.mxu0 %v4362_v62  ;;  %4076 = vmatpush3.bf16.msra.mxu0 %v4822_v16 }
  0x4f   : > { %4077 = vmatprep.subr.bf16.mxu0 %v4543_v1 }
  0x52   : > { %4078 = vmatpush3.bf16.msra.mxu0 %v4829_v17 }
  0x53   : > { %4079 = vmatprep.subr.bf16.mxu0 %v4543_v1 }
  0x55   : > { %529 = vmatmul.mubr.bf16.gmra.mrb[12].mxu0 %v4364_v63 }
  0x56   : > { %536 = vmatprep.mubr.bf16.mxu0 %v4366_v0  ;;  %4080 = vmatpush3.bf16.msra.mxu0 %v4842_v20 }
  0x57   : > { %4081 = vmatprep.subr.bf16.mxu0 %v4543_v1 }
  0x5a   : > { %4082 = vmatpush3.bf16.msra.mxu0 %v4851_v21 }
  0x5d   : > { %537 = vmatmul.mubr.bf16.gmra.mrb[16].mxu0 %v4369_v2 }
  0x5e   : > { %544 = vmatprep.mubr.bf16.mxu0 %v4371_v3 }
  0x65   : > { %545 = vmatmul.mubr.bf16.gmra.mrb[20].mxu0 %v4374_v4 }
  0x66   : > { %552 = vmatprep.mubr.bf16.mxu0 %v4376_v5 }
  0x6d   : > { %553 = vmatmul.mubr.bf16.gmra.mrb[24].mxu0 %v4379_v6 }
  0x6e   : > { %560 = vmatprep.mubr.bf16.mxu0 %v4383_v9 }
  0x75   : > { %561 = vmatmul.mubr.bf16.gmra.mrb[28].mxu0 %v4386_v11 }
  0x76   : > { %568 = vmatprep.mubr.bf16.mxu0 %v4389_v14 }
  0x7d   : > { %569 = vmatmul.mubr.bf16.gmra.mrb[32].mxu0 %v4391_v15 }
  0x7e   : > { %576 = vmatprep.mubr.bf16.mxu0 %v4394_v18 }
  0x85   : > { %577 = vmatmul.mubr.bf16.gmra.mrb[36].mxu0 %v4396_v19 }
  0x86   : > { %4083 = vmatprep.mubr.msk.bf16.mxu0 %vm4544_vm0, %v4543_v1 }
 0x110   : > { %v3821_v22 = vpop.f32.mrb[0].mxu0 }
 0x111   : > { %v3822_v23 = vpop.f32.mrb[1].mxu0 }
 0x112   : > { %v3823_v24 = vadd.f32 %v3822_v23, %v3821_v22  ;;  %v3824_v25 = vpop.f32.mrb[2].mxu0 }
 0x113   : > { %v3825_v26 = vpop.f32.mrb[3].mxu0 }
 0x114   : > { %v3826_v27 = vadd.f32 %v3825_v26, %v3824_v25 }
 0x116   : > { %v617_v28 = vpack.c.bf16 %v3826_v27, %v3823_v24 }
 0x118   : > { %v3827_v29 = vpop.f32.mrb[4].mxu0  ;;  %4018 = vmatmul.mubr.bf16.vlgmr.msra.gmra.mrb[0].mxu1 %v617_v28 }
 0x119   : > { %v3828_v30 = vpop.f32.mrb[5].mxu0  ;;  %4021 = vmatprep.mubr.msk.bf16.mxu1 %vm4544_vm0, %v4543_v1 }
 0x11a   : > { %v3829_v31 = vadd.f32 %v3828_v30, %v3827_v29  ;;  %v3830_v32 = vpop.f32.mrb[6].mxu0 }
 0x11b   : > { %v3831_v33 = vpop.f32.mrb[7].mxu0 }
 0x11c   : > { %v3832_v34 = vadd.f32 %v3831_v33, %v3830_v32 }
 0x11e   : > { %v618_v35 = vpack.c.bf16 %v3832_v34, %v3829_v31 }
 0x120   : > { %v3833_v36 = vpop.f32.mrb[8].mxu0  ;;  %4022 = vmatmul.mubr.bf16.gmra.mrb[4].mxu1 %v618_v35 }
 0x121   : > { %v3834_v37 = vpop.f32.mrb[9].mxu0  ;;  %4025 = vmatprep.mubr.msk.bf16.mxu1 %vm4544_vm0, %v4543_v1 }
 0x122   : > { %v3835_v38 = vadd.f32 %v3834_v37, %v3833_v36  ;;  %v3836_v39 = vpop.f32.mrb[10].mxu0  ;;  %v4399_v36 = vld [vmem:[%s5470_s4] sm:$0xff]  }
 0x123   : > { %v3837_v40 = vpop.f32.mrb[11].mxu0  ;;  %v3234_v37 = vld [vmem:[%s5469_s3] ss:$0 sm:$0xff] }
 0x124   : > { %v619_v41 = vpack.c.bf16 %v3835_v38, %v3835_v38  ;;  %v3838_v42 = vadd.f32 %v3837_v40, %v3836_v39 }
 0x128   : > { %v3839_v43 = vpop.f32.mrb[12].mxu0  ;;  %4026 = vmatmul.mubr.bf16.gmra.mrb[8].mxu1 %v619_v41 }
 0x129   : > { %v3840_v44 = vpop.f32.mrb[13].mxu0  ;;  %4035 = vmatprep.mubr.msk.bf16.mxu1 %vm867_vm1, %v4399_v36  ;;  %v4402_v36 = vld [vmem:[%s5470_s4 + $0x18] sm:$0xff]  }
 0x12a   : > { %v3841_v45 = vadd.f32 %v3840_v44, %v3839_v43  ;;  %v3842_v46 = vpop.f32.mrb[14].mxu0 }
 0x12b   : > { %v3843_v47 = vpop.f32.mrb[15].mxu0 }
 0x12c   : > { %v1241_v48 = vpack.c.bf16 %v3841_v45, %v3838_v42  ;;  %v3844_v49 = vadd.f32 %v3843_v47, %v3842_v46 }
 0x12e   : > { %4084 = vmatmul.mubr.bf16.vlgmr.msra.gmra.mrb[40].mxu0 %v1241_v48 }
 0x12f   : > { %4087 = vmatprep.mubr.msk.bf16.mxu0 %vm4544_vm0, %v4543_v1 }
 0x130   : > { %v3845_v50 = vpop.f32.mrb[16].mxu0 }
 0x131   : > { %v3846_v51 = vpop.f32.mrb[17].mxu0 }
 0x132   : > { %v3847_v52 = vadd.f32 %v3846_v51, %v3845_v50  ;;  %v3848_v53 = vpop.f32.mrb[18].mxu0 }
 0x133   : > { %v3849_v55 = vpop.f32.mrb[19].mxu0 }
 0x134   : > { %v1242_v54 = vpack.c.bf16 %v3847_v52, %v3844_v49  ;;  %v4860_v57 = vadd.f32 %v3849_v55, %v3848_v53 }
 0x136   : > { %4088 = vmatmul.mubr.bf16.gmra.mrb[44].mxu0 %v1242_v54 }
 0x138   : > { %v3851_v56 = vpop.f32.mrb[20].mxu0 }
 0x139   : > { %v3852_v59 = vpop.f32.mrb[21].mxu0 }
 0x13a   : > { %v3854_v60 = vpop.f32.mrb[22].mxu0  ;;  %v4862_v63 = vadd.f32 %v3852_v59, %v3851_v56 }
 0x13b   : > { %v3855_v61 = vpop.f32.mrb[23].mxu0 }
 0x13c   : > { %v4864_v0 = vadd.f32 %v3855_v61, %v3854_v60 }
 0x13e   : > { %v1866_v5 = vpack.c.bf16 %v4864_v0, %v4862_v63 }
 0x140   : > { %v3857_v62 = vpop.f32.mrb[24].mxu0 }
 0x141   : > { %v3858_v2 = vpop.f32.mrb[25].mxu0 }
 0x142   : > { %v4866_v3 = vadd.f32 %v3858_v2, %v3857_v62  ;;  %v3860_v4 = vpop.f32.mrb[26].mxu0 }
 0x143   : > { %v3861_v6 = vpop.f32.mrb[27].mxu0 }
 0x144   : > { %v4870_v9 = vadd.f32 %v3861_v6, %v3860_v4  ;;  %v4900_v4 = vld [vmem:[%s5469_s3 + $0x1] ss:$0 sm:$0xff] }
 0x146   : > { %v1867_v14 = vpack.c.bf16 %v4870_v9, %v4866_v3  ;;  %v4447_v3 = vld [vmem:[%s5470_s4 + $0x100] sm:$0xff]  }
 0x148   : > { %v3863_v7 = vpop.f32.mrb[28].mxu0 }
 0x149   : > { %v3864_v10 = vpop.f32.mrb[29].mxu0 }
 0x14a   : > { %v3866_v11 = vpop.f32.mrb[30].mxu0  ;;  %v4874_v19 = vadd.f32 %v3864_v10, %v3863_v7 }
 0x14b   : > { %v3867_v15 = vpop.f32.mrb[31].mxu0 }
 0x14c   : > { %v4876_v22 = vadd.f32 %v3867_v15, %v3866_v11  ;;  %v1868_v63 = vpack.c.bf16 %v4874_v19, %v4874_v19 }
 0x150   : > { %v3869_v18 = vpop.f32.mrb[32].mxu0 }
 0x151   : > { %v3870_v23 = vpop.f32.mrb[33].mxu0 }
 0x152   : > { %v4878_v24 = vadd.f32 %v3870_v23, %v3869_v18  ;;  %v3872_v25 = vpop.f32.mrb[34].mxu0  ;;  %v4400_v18 = vld [vmem:[%s5470_s4 + $0x8] sm:$0xff]  }
 0x153   : > { %v3873_v26 = vpop.f32.mrb[35].mxu0 }
 0x154   : > { %v2491_v27 = vpack.c.bf16 %v4878_v24, %v4876_v22  ;;  %v4882_v31 = vadd.f32 %v3873_v26, %v3872_v25  ;;  %v4401_v25 = vld [vmem:[%s5470_s4 + $0x10] sm:$0xff]  }
 0x158   : > { %v3875_v28 = vpop.f32.mrb[36].mxu0 }
 0x159   : > { %v3876_v29 = vpop.f32.mrb[37].mxu0 }
 0x15a   : > { %v3878_v30 = vpop.f32.mrb[38].mxu0  ;;  %v4884_v32 = vadd.f32 %v3876_v29, %v3875_v28 }
 0x15b   : > { %v3879_v33 = vpop.f32.mrb[39].mxu0 }
 0x15c   : > { %v4886_v34 = vadd.f32 %v3879_v33, %v3878_v30  ;;  %v2492_v35 = vpack.c.bf16 %v4884_v32, %v4882_v31 }
 0x15e   : > { %v2493_v0 = vpack.c.bf16 %v4886_v34, %v4886_v34 }
 0x1eb   : > { %v725_v38 = vpop.f32.mrb[0].mxu1 }
 0x1ec   : > { %v726_v39 = vadd.f32 %v3234_v37, %v725_v38  ;;  %v4019_v40 = vpop.f32.mrb[1].mxu1  ;;  %v4411_v38 = vld [vmem:[%s5470_s4 + $0x60] sm:$0xff]  }
 0x1ed   : > { %v728_v41 = vpop.f32.mrb[2].mxu1  ;;  %v4414_v40 = vld [vmem:[%s5470_s4 + $0x78] sm:$0xff]  }
 0x1ee   : > { %v729_v42 = vadd.f32 %v3234_v37, %v728_v41  ;;  %v4020_v43 = vpop.f32.mrb[3].mxu1  ;;  %v747_v44 = vmax.f32 %v726_v39, 0.0  ;;  %v4413_v39 = vld [vmem:[%s5470_s4 + $0x70] sm:$0xff]   ;;  %v1243_v41 = vpack.c.bf16 %v4860_v57, %v4860_v57  ;;  %v4415_v57 = vld [vmem:[%s5470_s4 + $0x80] sm:$0xff]  }
 0x1ef   : > { %4101 = vmatprep.mubr.msk.bf16.mxu0 %vm867_vm1, %v4415_v57 }
 0x1f0   : > { %v748_v45 = vmax.f32 %v729_v42, 0.0 }
 0x1f2   : > { %v784_v46 = vpack.c.bf16 %v748_v45, %v747_v44 }
 0x1f3   : > { %v733_v47 = vpop.f32.mrb[4].mxu1 }
 0x1f4   : > { %v734_v48 = vadd.f32 %v3234_v37, %v733_v47  ;;  %v4023_v49 = vpop.f32.mrb[5].mxu1  ;;  %4029 = vmatprep.subr.bf16.mxu1 %v784_v46 }
 0x1f5   : > { %v736_v50 = vpop.f32.mrb[6].mxu1  ;;  %4030 = vmatpush3.bf16.msra.mxu1 %v784_v46 }
 0x1f6   : > { %v737_v51 = vadd.f32 %v3234_v37, %v736_v50  ;;  %v4024_v52 = vpop.f32.mrb[7].mxu1  ;;  %v749_v53 = vmax.f32 %v734_v48, 0.0 }
 0x1f8   : > { %v750_v54 = vmax.f32 %v737_v51, 0.0  ;;  %v4416_v51 = vld [vmem:[%s5470_s4 + $0xc0] sm:$0xff]  }
 0x1fa   : > { %v785_v55 = vpack.c.bf16 %v750_v54, %v749_v53 }
 0x1fb   : > { %v741_v56 = vpop.f32.mrb[8].mxu1 }
 0x1fc   : > { %v742_v59 = vadd.f32 %v3234_v37, %v741_v56  ;;  %v4027_v60 = vpop.f32.mrb[9].mxu1  ;;  %4031 = vmatprep.subr.bf16.mxu1 %v785_v55  ;;  %v4403_v37 = vld [vmem:[%s5470_s4 + $0x20] sm:$0xff]  }
 0x1fd   : > { %v744_v61 = vpop.f32.mrb[10].mxu1  ;;  %4032 = vmatpush3.bf16.msra.mxu1 %v785_v55 }
 0x1fe   : > { %v751_v62 = vmax.f32 %v742_v59, 0.0  ;;  %v4028_v2 = vpop.f32.mrb[11].mxu1 }
 0x200   : > { %v786_v6 = vpack.c.bf16 %v751_v62, %v751_v62 }
 0x201   : > { %v1351_v7 = vpop.f32.mrb[40].mxu0 }
 0x202   : > { %v1352_v10 = vadd.f32 %v4900_v4, %v1351_v7  ;;  %4287 = vmatprep.subr.msk.bf16.mxu1 %vm916_vm2, %v786_v6  ;;  %v4085_v11 = vpop.f32.mrb[41].mxu0  ;;  %v918_v15 = vsel %vm916_vm2, %v786_v6, 0 }
 0x203   : > { %4034 = vmatpush3.bf16.msra.mxu1 %v918_v15  ;;  %v1354_v23 = vpop.f32.mrb[42].mxu0 }
 0x204   : > { %v1355_v26 = vadd.f32 %v4900_v4, %v1354_v23  ;;  %v4086_v28 = vpop.f32.mrb[43].mxu0  ;;  %4265 = vmatprep.subr.bf16.mxu1 %v4543_v1  ;;  %v1373_v29 = vmax.f32 %v1352_v10, 0.0 }
 0x206   : > { %v1374_v30 = vmax.f32 %v1355_v26, 0.0  ;;  %4036 = vmatmul.mubr.msk.bf16.vlgmr.msra.gmra.mrb[12].mxu1 %vm867_vm1, %v4400_v18 }
 0x207   : > { %4273 = vmatpush3.bf16.msra.mxu1 %v4738_v58  ;;  %4039 = vmatprep.mubr.msk.bf16.mxu1 %vm867_vm1, %v4401_v25  ;;  %v4404_v58 = vld [vmem:[%s5470_s4 + $0x28] sm:$0xff]  }
 0x208   : > { %v1411_v33 = vpack.c.bf16 %v1374_v30, %v1373_v29  ;;  %4266 = vmatprep.subr.bf16.mxu1 %v4543_v1 }
 0x209   : > { %v1359_v42 = vpop.f32.mrb[44].mxu0 }
 0x20a   : > { %4095 = vmatprep.subr.bf16.mxu0 %v1411_v33  ;;  %v1360_v43 = vadd.f32 %v4900_v4, %v1359_v42  ;;  %v4089_v44 = vpop.f32.mrb[45].mxu0 }
 0x20b   : > { %4274 = vmatpush3.bf16.msra.mxu1 %v4783_v8  ;;  %4096 = vmatpush3.bf16.msra.mxu0 %v1411_v33  ;;  %v4405_v8 = vld [vmem:[%s5470_s4 + $0x30] sm:$0xff]   ;;  %v1362_v45 = vpop.f32.mrb[46].mxu0 }
 0x20c   : > { %4267 = vmatprep.subr.bf16.mxu1 %v4543_v1  ;;  %v1375_v46 = vmax.f32 %v1360_v43, 0.0  ;;  %v1363_v47 = vadd.f32 %v4900_v4, %v1362_v45  ;;  %v4090_v48 = vpop.f32.mrb[47].mxu0 }
 0x20e   : > { %4040 = vmatmul.mubr.msk.bf16.gmra.mrb[16].mxu1 %vm867_vm1, %v4402_v36  ;;  %v1376_v49 = vmax.f32 %v1363_v47, 0.0 }
 0x20f   : > { %4275 = vmatpush3.bf16.msra.mxu1 %v4800_v12  ;;  %4043 = vmatprep.mubr.msk.bf16.mxu1 %vm867_vm1, %v4403_v37  ;;  %v4406_v12 = vld [vmem:[%s5470_s4 + $0x38] sm:$0xff]  }
 0x210   : > { %4268 = vmatprep.subr.bf16.mxu1 %v4543_v1  ;;  %v1412_v50 = vpack.c.bf16 %v1376_v49, %v1375_v46 }
 0x212   : > { %4097 = vmatprep.subr.bf16.mxu0 %v1412_v50 }
 0x213   : > { %4276 = vmatpush3.bf16.msra.mxu1 %v4809_v13  ;;  %v4407_v13 = vld [vmem:[%s5470_s4 + $0x40] sm:$0xff]   ;;  %4098 = vmatpush3.bf16.msra.mxu0 %v1412_v50 }
 0x214   : > { %4269 = vmatprep.subr.bf16.mxu1 %v4543_v1 }
 0x216   : > { %4044 = vmatmul.mubr.msk.bf16.gmra.mrb[20].mxu1 %vm867_vm1, %v4404_v58 }
 0x217   : > { %4277 = vmatpush3.bf16.msra.mxu1 %v4822_v16  ;;  %4047 = vmatprep.mubr.msk.bf16.mxu1 %vm867_vm1, %v4405_v8  ;;  %v4408_v16 = vld [vmem:[%s5470_s4 + $0x48] sm:$0xff]  }
 0x218   : > { %4270 = vmatprep.subr.bf16.mxu1 %v4543_v1 }
 0x21b   : > { %4278 = vmatpush3.bf16.msra.mxu1 %v4829_v17  ;;  %v4409_v17 = vld [vmem:[%s5470_s4 + $0x50] sm:$0xff]  }
 0x21c   : > { %4271 = vmatprep.subr.bf16.mxu1 %v4543_v1 }
 0x21e   : > { %4048 = vmatmul.mubr.msk.bf16.gmra.mrb[24].mxu1 %vm867_vm1, %v4406_v12 }
 0x21f   : > { %4279 = vmatpush3.bf16.msra.mxu1 %v4842_v20  ;;  %4051 = vmatprep.mubr.msk.bf16.mxu1 %vm867_vm1, %v4407_v13  ;;  %v4410_v20 = vld [vmem:[%s5470_s4 + $0x58] sm:$0xff]  }
 0x220   : > { %4272 = vmatprep.subr.bf16.mxu1 %v4543_v1 }
 0x223   : > { %4280 = vmatpush3.bf16.msra.mxu1 %v4851_v21  ;;  %v4412_v21 = vld [vmem:[%s5470_s4 + $0x68] sm:$0xff]  }
 0x224   : > { %4281 = vmatprep.subr.bf16.mxu1 %v1411_v33 }
 0x226   : > { %4052 = vmatmul.mubr.msk.bf16.gmra.mrb[28].mxu1 %vm867_vm1, %v4408_v16 }
 0x227   : > { %4055 = vmatprep.mubr.msk.bf16.mxu1 %vm867_vm1, %v4409_v17 }
 0x22e   : > { %4056 = vmatmul.mubr.msk.bf16.gmra.mrb[32].mxu1 %vm867_vm1, %v4410_v20 }
 0x22f   : > { %4059 = vmatprep.mubr.msk.bf16.mxu1 %vm867_vm1, %v4411_v38 }
 0x236   : > { %4060 = vmatmul.mubr.msk.bf16.gmra.mrb[36].mxu1 %vm867_vm1, %v4412_v21 }
 0x237   : > { %4063 = vmatprep.mubr.msk.bf16.mxu1 %vm867_vm1, %v4413_v39 }
 0x23e   : > { %4064 = vmatmul.mubr.msk.bf16.gmra.mrb[40].mxu1 %vm867_vm1, %v4414_v40 }
 0x23f   : > { %4091 = vmatprep.mubr.msk.bf16.mxu1 %vm4544_vm0, %v4543_v1 }
 0x246   : > { %4092 = vmatmul.mubr.bf16.vlgmr.msra.gmra.mrb[44].mxu1 %v1243_v41 }
 0x247   : > { %4284 = vmatpush3.bf16.msra.mxu1 %v1411_v33  ;;  %4117 = vmatprep.mubr.msk.bf16.mxu1 %vm867_vm1, %v4416_v51 }
 0x248   : > { %4282 = vmatprep.subr.bf16.mxu1 %v1412_v50 }
 0x24b   : > { %4285 = vmatpush3.bf16.msra.mxu1 %v1412_v50 }
 0x2d9   : > { %v4037_v52 = vpop.f32.mrb[12].mxu1 }
 0x2da   : > { %v3679_v53 = vpack.c.bf16 %v4037_v52, %v4037_v52  ;;  %v954_v54 = vpop.f32.mrb[13].mxu1 }
 0x2db   : > { %v3677_v55 = vpack.c.bf16 %v954_v54, %v954_v54  ;;  %v4038_v56 = vpop.f32.mrb[14].mxu1 }
 0x2dc   : > { %1211 = vst [vmem:[%s4643_s14 + $0x38] sm:$0xf] %v3679_v53  ;;  %v3680_v59 = vpack.c.bf16 %v4038_v56, %v4038_v56  ;;  %v957_v60 = vpop.f32.mrb[15].mxu1 }
 0x2dd   : > { %1209 = vst [vmem:[%s4643_s14 + $0x10] sm:$0xf] %v3677_v55  ;;  %v3678_v61 = vpack.c.bf16 %v957_v60, %v957_v60 }
 0x2de   : > { %1212 = vst [vmem:[%s4643_s14 + $0x4c] sm:$0xf] %v3680_v59 }
 0x2df   : > { %1210 = vst [vmem:[%s4643_s14 + $0x24] sm:$0xf] %v3678_v61 }
 0x2e1   : > { %v4041_v62 = vpop.f32.mrb[16].mxu1 }
 0x2e2   : > { %v3683_v2 = vpack.c.bf16 %v4041_v62, %v4041_v62  ;;  %v970_v6 = vpop.f32.mrb[17].mxu1 }
 0x2e3   : > { %v3681_v7 = vpack.c.bf16 %v970_v6, %v970_v6  ;;  %v4042_v10 = vpop.f32.mrb[18].mxu1 }
 0x2e4   : > { %1215 = vst [vmem:[%s4643_s14 + $0x88] sm:$0xf] %v3683_v2  ;;  %v3684_v11 = vpack.c.bf16 %v4042_v10, %v4042_v10  ;;  %v973_v15 = vpop.f32.mrb[19].mxu1 }
 0x2e5   : > { %1213 = vst [vmem:[%s4643_s14 + $0x60] sm:$0xf] %v3681_v7  ;;  %v3682_v18 = vpack.c.bf16 %v973_v15, %v973_v15 }
 0x2e6   : > { %1216 = vst [vmem:[%s4643_s14 + $0x9c] sm:$0xf] %v3684_v11 }
 0x2e7   : > { %1214 = vst [vmem:[%s4643_s14 + $0x74] sm:$0xf] %v3682_v18 }
 0x2e9   : > { %v4045_v23 = vpop.f32.mrb[20].mxu1 }
 0x2ea   : > { %v3687_v25 = vpack.c.bf16 %v4045_v23, %v4045_v23  ;;  %v986_v26 = vpop.f32.mrb[21].mxu1 }
 0x2eb   : > { %v3685_v28 = vpack.c.bf16 %v986_v26, %v986_v26  ;;  %v4046_v29 = vpop.f32.mrb[22].mxu1 }
 0x2ec   : > { %1219 = vst [vmem:[%s4643_s14 + $0xd8] sm:$0xf] %v3687_v25  ;;  %v3688_v30 = vpack.c.bf16 %v4046_v29, %v4046_v29  ;;  %v989_v33 = vpop.f32.mrb[23].mxu1 }
 0x2ed   : > { %1217 = vst [vmem:[%s4643_s14 + $0xb0] sm:$0xf] %v3685_v28  ;;  %v3686_v36 = vpack.c.bf16 %v989_v33, %v989_v33 }
 0x2ee   : > { %1220 = vst [vmem:[%s4643_s14 + $0xec] sm:$0xf] %v3688_v30 }
 0x2ef   : > { %1218 = vst [vmem:[%s4643_s14 + $0xc4] sm:$0xf] %v3686_v36 }
 0x2f1   : > { %v4049_v37 = vpop.f32.mrb[24].mxu1 }
 0x2f2   : > { %v3691_v58 = vpack.c.bf16 %v4049_v37, %v4049_v37  ;;  %v1002_v8 = vpop.f32.mrb[25].mxu1  ;;  %v4417_v37 = vld [vmem:[%s5470_s4 + $0x88] sm:$0xff]  }
 0x2f3   : > { %v3689_v12 = vpack.c.bf16 %v1002_v8, %v1002_v8  ;;  %v4050_v13 = vpop.f32.mrb[26].mxu1  ;;  %v4420_v8 = vld [vmem:[%s5468_s2 + $0xc0] sm:$0xff]  }
 0x2f4   : > { %1223 = vst [vmem:[%s4643_s14 + $0x128] sm:$0xf] %v3691_v58  ;;  %v3692_v16 = vpack.c.bf16 %v4050_v13, %v4050_v13  ;;  %v1005_v17 = vpop.f32.mrb[27].mxu1  ;;  %v4418_v58 = vld [vmem:[%s5470_s4 + $0xc8] sm:$0xff]   ;;  %v4424_v13 = vld [vmem:[%s5470_s4 + $0xd0] sm:$0xff]  }
 0x2f5   : > { %1221 = vst [vmem:[%s4643_s14 + $0x100] sm:$0xf] %v3689_v12  ;;  %v3690_v20 = vpack.c.bf16 %v1005_v17, %v1005_v17  ;;  %v4423_v12 = vld [vmem:[%s5470_s4 + $0x90] sm:$0xff]   ;;  %v4422_v17 = vld [vmem:[%s5468_s2 + $0xc8] sm:$0xff]  }
 0x2f6   : > { %1224 = vst [vmem:[%s4643_s14 + $0x13c] sm:$0xf] %v3692_v16  ;;  %v4421_v16 = vld [vmem:[%s5468_s2 + $0x88] sm:$0xff]  }
 0x2f7   : > { %1222 = vst [vmem:[%s4643_s14 + $0x114] sm:$0xf] %v3690_v20  ;;  %v4425_v20 = vld [vmem:[%s5470_s4 + $0x98] sm:$0xff]  }
 0x2f9   : > { %v4053_v38 = vpop.f32.mrb[28].mxu1 }
 0x2fa   : > { %v3695_v21 = vpack.c.bf16 %v4053_v38, %v4053_v38  ;;  %v1018_v39 = vpop.f32.mrb[29].mxu1  ;;  %v4426_v38 = vld [vmem:[%s5470_s4 + $0xd8] sm:$0xff]  }
 0x2fb   : > { %v3693_v40 = vpack.c.bf16 %v1018_v39, %v1018_v39  ;;  %v4054_v41 = vpop.f32.mrb[30].mxu1  ;;  %v4428_v39 = vld [vmem:[%s5468_s2 + $0xd0] sm:$0xff]  }
 0x2fc   : > { %1227 = vst [vmem:[%s4643_s14 + $0x178] sm:$0xf] %v3695_v21  ;;  %v3696_v42 = vpack.c.bf16 %v4054_v41, %v4054_v41  ;;  %v1021_v43 = vpop.f32.mrb[31].mxu1  ;;  %v4427_v21 = vld [vmem:[%s5468_s2 + $0x90] sm:$0xff]   ;;  %v4432_v41 = vld [vmem:[%s5470_s4 + $0xe0] sm:$0xff]  }
 0x2fd   : > { %1225 = vst [vmem:[%s4643_s14 + $0x150] sm:$0xf] %v3693_v40  ;;  %v3694_v44 = vpack.c.bf16 %v1021_v43, %v1021_v43  ;;  %v4431_v40 = vld [vmem:[%s5470_s4 + $0xa0] sm:$0xff]   ;;  %v4430_v43 = vld [vmem:[%s5468_s2 + $0xd8] sm:$0xff]  }
 0x2fe   : > { %1228 = vst [vmem:[%s4643_s14 + $0x18c] sm:$0xf] %v3696_v42  ;;  %v4429_v42 = vld [vmem:[%s5468_s2 + $0x98] sm:$0xff]  }
 0x2ff   : > { %1226 = vst [vmem:[%s4643_s14 + $0x164] sm:$0xf] %v3694_v44  ;;  %v4433_v44 = vld [vmem:[%s5470_s4 + $0xa8] sm:$0xff]  }
 0x301   : > { %v4057_v45 = vpop.f32.mrb[32].mxu1 }
 0x302   : > { %v3699_v46 = vpack.c.bf16 %v4057_v45, %v4057_v45  ;;  %v1034_v47 = vpop.f32.mrb[33].mxu1  ;;  %v4434_v45 = vld [vmem:[%s5470_s4 + $0xe8] sm:$0xff]  }
 0x303   : > { %v3697_v48 = vpack.c.bf16 %v1034_v47, %v1034_v47  ;;  %v4058_v49 = vpop.f32.mrb[34].mxu1  ;;  %v4436_v47 = vld [vmem:[%s5468_s2 + $0xe0] sm:$0xff]  }
 0x304   : > { %1231 = vst [vmem:[%s4643_s14 + $0x1c8] sm:$0xf] %v3699_v46  ;;  %v3700_v50 = vpack.c.bf16 %v4058_v49, %v4058_v49  ;;  %v1037_v57 = vpop.f32.mrb[35].mxu1  ;;  %v4435_v46 = vld [vmem:[%s5468_s2 + $0xa0] sm:$0xff]   ;;  %v4440_v49 = vld [vmem:[%s5470_s4 + $0xf0] sm:$0xff]  }
 0x305   : > { %1229 = vst [vmem:[%s4643_s14 + $0x1a0] sm:$0xf] %v3697_v48  ;;  %v3698_v51 = vpack.c.bf16 %v1037_v57, %v1037_v57  ;;  %v4439_v48 = vld [vmem:[%s5470_s4 + $0xb0] sm:$0xff]   ;;  %v4438_v57 = vld [vmem:[%s5468_s2 + $0xe8] sm:$0xff]  }
 0x306   : > { %1232 = vst [vmem:[%s4643_s14 + $0x1dc] sm:$0xf] %v3700_v50  ;;  %v4437_v50 = vld [vmem:[%s5468_s2 + $0xa8] sm:$0xff]  }
 0x307   : > { %1230 = vst [vmem:[%s4643_s14 + $0x1b4] sm:$0xf] %v3698_v51  ;;  %v4441_v51 = vld [vmem:[%s5470_s4 + $0xb8] sm:$0xff]  }
 0x309   : > { %v4061_v52 = vpop.f32.mrb[36].mxu1 }
 0x30a   : > { %v3703_v53 = vpack.c.bf16 %v4061_v52, %v4061_v52  ;;  %v1050_v54 = vpop.f32.mrb[37].mxu1  ;;  %v4442_v52 = vld [vmem:[%s5470_s4 + $0xf8] sm:$0xff]  }
 0x30b   : > { %v3701_v55 = vpack.c.bf16 %v1050_v54, %v1050_v54  ;;  %v4062_v56 = vpop.f32.mrb[38].mxu1  ;;  %v4444_v54 = vld [vmem:[%s5468_s2 + $0xf0] sm:$0xff]  }
 0x30c   : > { %1235 = vst [vmem:[%s4643_s14 + $0x218] sm:$0xf] %v3703_v53  ;;  %v3704_v59 = vpack.c.bf16 %v4062_v56, %v4062_v56  ;;  %v1053_v60 = vpop.f32.mrb[39].mxu1  ;;  %v4443_v53 = vld [vmem:[%s5468_s2 + $0xb0] sm:$0xff]   ;;  %v4446_v56 = vld [vmem:[%s5468_s2 + $0xf8] sm:$0xff]  }
 0x30d   : > { %1233 = vst [vmem:[%s4643_s14 + $0x1f0] sm:$0xf] %v3701_v55  ;;  %v3702_v61 = vpack.c.bf16 %v1053_v60, %v1053_v60  ;;  %v4445_v55 = vld [vmem:[%s5468_s2 + $0xb8] sm:$0xff]  }
 0x30e   : > { %1236 = vst [vmem:[%s4643_s14 + $0x22c] sm:$0xf] %v3704_v59 }
 0x30f   : > { %1234 = vst [vmem:[%s4643_s14 + $0x204] sm:$0xf] %v3702_v61 }
 0x311   : > { %v4065_v62 = vpop.f32.mrb[40].mxu1 }
 0x312   : > { %v3707_v2 = vpack.c.bf16 %v4065_v62, %v4065_v62  ;;  %v1066_v6 = vpop.f32.mrb[41].mxu1 }
 0x313   : > { %v3705_v7 = vpack.c.bf16 %v1066_v6, %v1066_v6  ;;  %v4066_v10 = vpop.f32.mrb[42].mxu1 }
 0x314   : > { %1239 = vst [vmem:[%s4643_s14 + $0x268] sm:$0xf] %v3707_v2  ;;  %v3708_v11 = vpack.c.bf16 %v4066_v10, %v4066_v10  ;;  %v1069_v15 = vpop.f32.mrb[43].mxu1 }
 0x315   : > { %1237 = vst [vmem:[%s4643_s14 + $0x240] sm:$0xf] %v3705_v7  ;;  %v3706_v18 = vpack.c.bf16 %v1069_v15, %v1069_v15 }
 0x316   : > { %1240 = vst [vmem:[%s4643_s14 + $0x27c] sm:$0xf] %v3708_v11 }
 0x317   : > { %1238 = vst [vmem:[%s4643_s14 + $0x254] sm:$0xf] %v3706_v18 }
 0x319   : > { %v1367_v23 = vpop.f32.mrb[44].mxu1 }
 0x31a   : > { %v1368_v25 = vadd.f32 %v4900_v4, %v1367_v23  ;;  %v4093_v26 = vpop.f32.mrb[45].mxu1  ;;  %v4419_v4 = vld [vmem:[%s5468_s2 + $0x80] sm:$0xff]  }
 0x31b   : > { %v1370_v28 = vpop.f32.mrb[46].mxu1 }
 0x31c   : > { %v1377_v29 = vmax.f32 %v1368_v25, 0.0  ;;  %v4094_v30 = vpop.f32.mrb[47].mxu1 }
 0x31e   : > { %v1413_v33 = vpack.c.bf16 %v1377_v29, %v1377_v29 }
 0x320   : > { %4288 = vmatprep.subr.msk.bf16.mxu0 %vm916_vm2, %v1413_v33  ;;  %4289 = vmatprep.subr.msk.bf16.mxu1 %vm916_vm2, %v1413_v33  ;;  %v1543_v36 = vsel %vm916_vm2, %v1413_v33, 0 }
 0x321   : > { %4100 = vmatpush3.bf16.msra.mxu0 %v1543_v36  ;;  %4286 = vmatpush3.bf16.msra.mxu1 %v1543_v36 }
 0x322   : > { %4133 = vmatprep.subr.bf16.mxu0 %v4543_v1  ;;  %4199 = vmatprep.subr.bf16.mxu1 %v4543_v1 }
 0x324   : > { %4102 = vmatmul.mubr.msk.bf16.vlgmr.msra.gmra.mrb[48].mxu0 %vm867_vm1, %v4417_v37  ;;  %4118 = vmatmul.mubr.msk.bf16.vlgmr.msra.gmra.mrb[48].mxu1 %vm867_vm1, %v4418_v58 }
 0x325   : > { %4134 = vmatpush3.bf16.msra.mxu0 %v4419_v4  ;;  %4200 = vmatpush3.bf16.msra.mxu1 %v4420_v8 }
 0x326   : > { %4135 = vmatprep.subr.bf16.mxu0 %v4543_v1  ;;  %4201 = vmatprep.subr.bf16.mxu1 %v4543_v1 }
 0x327   : > { %4105 = vmatprep.mubr.msk.bf16.mxu0 %vm867_vm1, %v4423_v12  ;;  %4121 = vmatprep.mubr.msk.bf16.mxu1 %vm867_vm1, %v4424_v13 }
 0x329   : > { %4136 = vmatpush3.bf16.msra.mxu0 %v4421_v16  ;;  %4202 = vmatpush3.bf16.msra.mxu1 %v4422_v17 }
 0x32a   : > { %4137 = vmatprep.subr.bf16.mxu0 %v4543_v1  ;;  %4203 = vmatprep.subr.bf16.mxu1 %v4543_v1 }
 0x32c   : > { %4106 = vmatmul.mubr.msk.bf16.gmra.mrb[52].mxu0 %vm867_vm1, %v4425_v20  ;;  %4122 = vmatmul.mubr.msk.bf16.gmra.mrb[52].mxu1 %vm867_vm1, %v4426_v38 }
 0x32d   : > { %4138 = vmatpush3.bf16.msra.mxu0 %v4427_v21  ;;  %4204 = vmatpush3.bf16.msra.mxu1 %v4428_v39 }
 0x32e   : > { %4139 = vmatprep.subr.bf16.mxu0 %v4543_v1  ;;  %4205 = vmatprep.subr.bf16.mxu1 %v4543_v1 }
 0x32f   : > { %4109 = vmatprep.mubr.msk.bf16.mxu0 %vm867_vm1, %v4431_v40  ;;  %4125 = vmatprep.mubr.msk.bf16.mxu1 %vm867_vm1, %v4432_v41 }
 0x331   : > { %4140 = vmatpush3.bf16.msra.mxu0 %v4429_v42  ;;  %4206 = vmatpush3.bf16.msra.mxu1 %v4430_v43 }
 0x332   : > { %4141 = vmatprep.subr.bf16.mxu0 %v4543_v1  ;;  %4207 = vmatprep.subr.bf16.mxu1 %v4543_v1 }
 0x334   : > { %4110 = vmatmul.mubr.msk.bf16.gmra.mrb[56].mxu0 %vm867_vm1, %v4433_v44  ;;  %4126 = vmatmul.mubr.msk.bf16.gmra.mrb[56].mxu1 %vm867_vm1, %v4434_v45 }
 0x335   : > { %4142 = vmatpush3.bf16.msra.mxu0 %v4435_v46  ;;  %4208 = vmatpush3.bf16.msra.mxu1 %v4436_v47 }
 0x336   : > { %4143 = vmatprep.subr.bf16.mxu0 %v4543_v1  ;;  %4209 = vmatprep.subr.bf16.mxu1 %v4543_v1 }
 0x337   : > { %4113 = vmatprep.mubr.msk.bf16.mxu0 %vm867_vm1, %v4439_v48  ;;  %4129 = vmatprep.mubr.msk.bf16.mxu1 %vm867_vm1, %v4440_v49 }
 0x339   : > { %4144 = vmatpush3.bf16.msra.mxu0 %v4437_v50  ;;  %4210 = vmatpush3.bf16.msra.mxu1 %v4438_v57 }
 0x33a   : > { %4145 = vmatprep.subr.bf16.mxu0 %v4543_v1  ;;  %4211 = vmatprep.subr.bf16.mxu1 %v4543_v1 }
 0x33c   : > { %4114 = vmatmul.mubr.msk.bf16.gmra.mrb[60].mxu0 %vm867_vm1, %v4441_v51  ;;  %4130 = vmatmul.mubr.msk.bf16.gmra.mrb[60].mxu1 %vm867_vm1, %v4442_v52 }
 0x33d   : > { %4146 = vmatpush3.bf16.msra.mxu0 %v4443_v53  ;;  %4212 = vmatpush3.bf16.msra.mxu1 %v4444_v54 }
 0x33e   : > { %4147 = vmatprep.subr.bf16.mxu0 %v4543_v1  ;;  %4213 = vmatprep.subr.bf16.mxu1 %v4543_v1 }
 0x33f   : > { %4149 = vmatprep.mubr.msk.bf16.mxu0 %vm4544_vm0, %v4543_v1  ;;  %4215 = vmatprep.mubr.msk.bf16.mxu1 %vm4544_vm0, %v4543_v1 }
 0x341   : > { %4148 = vmatpush3.bf16.msra.mxu0 %v4445_v55  ;;  %4214 = vmatpush3.bf16.msra.mxu1 %v4446_v56 }
 0x344   : > { %4150 = vmatmul.mubr.bf16.vlgmr.msra.gmra.mrb[64].mxu0 %v1866_v5  ;;  %4216 = vmatmul.mubr.bf16.vlgmr.msra.gmra.mrb[64].mxu1 %v2491_v27  ;;  %v4448_v5 = vld [vmem:[%s5470_s4 + $0x180] sm:$0xff]  }
 0x345   : > { %4153 = vmatprep.mubr.msk.bf16.mxu0 %vm4544_vm0, %v4543_v1  ;;  %4219 = vmatprep.mubr.msk.bf16.mxu1 %vm4544_vm0, %v4543_v1 }
 0x34c   : > { %4154 = vmatmul.mubr.bf16.gmra.mrb[68].mxu0 %v1867_v14  ;;  %4220 = vmatmul.mubr.bf16.gmra.mrb[68].mxu1 %v2492_v35 }
 0x34d   : > { %4157 = vmatprep.mubr.msk.bf16.mxu0 %vm4544_vm0, %v4543_v1  ;;  %4223 = vmatprep.mubr.msk.bf16.mxu1 %vm4544_vm0, %v4543_v1 }
 0x354   : > { %4158 = vmatmul.mubr.bf16.gmra.mrb[72].mxu0 %v1868_v63  ;;  %4224 = vmatmul.mubr.bf16.gmra.mrb[72].mxu1 %v2493_v0 }
 0x355   : > { %4167 = vmatprep.mubr.msk.bf16.mxu0 %vm867_vm1, %v4447_v3  ;;  %4233 = vmatprep.mubr.msk.bf16.mxu1 %vm867_vm1, %v4448_v5 }
 0x3f7   : > { %v4103_v1 = vpop.f32.mrb[48].mxu0  ;;  %v4119_v9 = vpop.f32.mrb[48].mxu1 }
 0x3f8   : > { %v3711_v14 = vpack.c.bf16 %v4103_v1, %v4103_v1  ;;  %v3727_v19 = vpack.c.bf16 %v4119_v9, %v4119_v9  ;;  %v1579_v22 = vpop.f32.mrb[49].mxu0  ;;  %v1643_v24 = vpop.f32.mrb[49].mxu1  ;;  %v3446_v1 = vld [vmem:[%s5469_s3 + $0x2] ss:$0 sm:$0xff]  ;;  %v3568_v9 = vld [vmem:[%s5469_s3 + $0x3] ss:$0 sm:$0xff] }
 0x3f9   : > { %v3709_v27 = vpack.c.bf16 %v1579_v22, %v1579_v22  ;;  %v3725_v31 = vpack.c.bf16 %v1643_v24, %v1643_v24  ;;  %v4104_v32 = vpop.f32.mrb[50].mxu0  ;;  %v4120_v34 = vpop.f32.mrb[50].mxu1 }
 0x3fa   : > { %1836 = vst [vmem:[%s4643_s14 + $0x34] sm:$0xf] %v3711_v14  ;;  %1852 = vst [vmem:[%s4643_s14 + $0x174] sm:$0xf] %v3727_v19  ;;  %v3712_v35 = vpack.c.bf16 %v4104_v32, %v4104_v32  ;;  %v3728_v59 = vpack.c.bf16 %v4120_v34, %v4120_v34  ;;  %v1582_v60 = vpop.f32.mrb[51].mxu0  ;;  %v1646_v61 = vpop.f32.mrb[51].mxu1 }
 0x3fb   : > { %1834 = vst [vmem:[%s4643_s14 + $0xc] sm:$0xf] %v3709_v27  ;;  %1850 = vst [vmem:[%s4643_s14 + $0x14c] sm:$0xf] %v3725_v31  ;;  %v3710_v62 = vpack.c.bf16 %v1582_v60, %v1582_v60  ;;  %v3726_v2 = vpack.c.bf16 %v1646_v61, %v1646_v61 }
 0x3fc   : > { %1837 = vst [vmem:[%s4643_s14 + $0x48] sm:$0xf] %v3712_v35  ;;  %1853 = vst [vmem:[%s4643_s14 + $0x188] sm:$0xf] %v3728_v59 }
 0x3fd   : > { %1835 = vst [vmem:[%s4643_s14 + $0x20] sm:$0xf] %v3710_v62  ;;  %1851 = vst [vmem:[%s4643_s14 + $0x160] sm:$0xf] %v3726_v2 }
 0x3ff   : > { %v4107_v6 = vpop.f32.mrb[52].mxu0  ;;  %v4123_v7 = vpop.f32.mrb[52].mxu1 }
 0x400   : > { %v3715_v10 = vpack.c.bf16 %v4107_v6, %v4107_v6  ;;  %v3731_v11 = vpack.c.bf16 %v4123_v7, %v4123_v7  ;;  %v1595_v15 = vpop.f32.mrb[53].mxu0  ;;  %v1659_v18 = vpop.f32.mrb[53].mxu1 }
 0x401   : > { %v3713_v23 = vpack.c.bf16 %v1595_v15, %v1595_v15  ;;  %v3729_v25 = vpack.c.bf16 %v1659_v18, %v1659_v18  ;;  %v4108_v26 = vpop.f32.mrb[54].mxu0  ;;  %v4124_v28 = vpop.f32.mrb[54].mxu1 }
 0x402   : > { %1840 = vst [vmem:[%s4643_s14 + $0x84] sm:$0xf] %v3715_v10  ;;  %1856 = vst [vmem:[%s4643_s14 + $0x1c4] sm:$0xf] %v3731_v11  ;;  %v3716_v29 = vpack.c.bf16 %v4108_v26, %v4108_v26  ;;  %v3732_v30 = vpack.c.bf16 %v4124_v28, %v4124_v28  ;;  %v1598_v33 = vpop.f32.mrb[55].mxu0  ;;  %v1662_v36 = vpop.f32.mrb[55].mxu1 }
 0x403   : > { %1838 = vst [vmem:[%s4643_s14 + $0x5c] sm:$0xf] %v3713_v23  ;;  %1854 = vst [vmem:[%s4643_s14 + $0x19c] sm:$0xf] %v3729_v25  ;;  %v3714_v37 = vpack.c.bf16 %v1598_v33, %v1598_v33  ;;  %v3730_v58 = vpack.c.bf16 %v1662_v36, %v1662_v36 }
 0x404   : > { %1841 = vst [vmem:[%s4643_s14 + $0x98] sm:$0xf] %v3716_v29  ;;  %1857 = vst [vmem:[%s4643_s14 + $0x1d8] sm:$0xf] %v3732_v30 }
 0x405   : > { %1839 = vst [vmem:[%s4643_s14 + $0x70] sm:$0xf] %v3714_v37  ;;  %1855 = vst [vmem:[%s4643_s14 + $0x1b0] sm:$0xf] %v3730_v58 }
 0x407   : > { %v4111_v4 = vpop.f32.mrb[56].mxu0  ;;  %v4127_v8 = vpop.f32.mrb[56].mxu1 }
 0x408   : > { %v3719_v12 = vpack.c.bf16 %v4111_v4, %v4111_v4  ;;  %v3735_v13 = vpack.c.bf16 %v4127_v8, %v4127_v8  ;;  %v1611_v16 = vpop.f32.mrb[57].mxu0  ;;  %v1675_v17 = vpop.f32.mrb[57].mxu1 }
 0x409   : > { %v3717_v20 = vpack.c.bf16 %v1611_v16, %v1611_v16  ;;  %v3733_v38 = vpack.c.bf16 %v1675_v17, %v1675_v17  ;;  %v4112_v21 = vpop.f32.mrb[58].mxu0  ;;  %v4128_v39 = vpop.f32.mrb[58].mxu1 }
 0x40a   : > { %1844 = vst [vmem:[%s4643_s14 + $0xd4] sm:$0xf] %v3719_v12  ;;  %1860 = vst [vmem:[%s4643_s14 + $0x214] sm:$0xf] %v3735_v13  ;;  %v3720_v40 = vpack.c.bf16 %v4112_v21, %v4112_v21  ;;  %v3736_v41 = vpack.c.bf16 %v4128_v39, %v4128_v39  ;;  %v1614_v42 = vpop.f32.mrb[59].mxu0  ;;  %v1678_v43 = vpop.f32.mrb[59].mxu1 }
 0x40b   : > { %1842 = vst [vmem:[%s4643_s14 + $0xac] sm:$0xf] %v3717_v20  ;;  %1858 = vst [vmem:[%s4643_s14 + $0x1ec] sm:$0xf] %v3733_v38  ;;  %v3718_v44 = vpack.c.bf16 %v1614_v42, %v1614_v42  ;;  %v3734_v45 = vpack.c.bf16 %v1678_v43, %v1678_v43 }
 0x40c   : > { %1845 = vst [vmem:[%s4643_s14 + $0xe8] sm:$0xf] %v3720_v40  ;;  %1861 = vst [vmem:[%s4643_s14 + $0x228] sm:$0xf] %v3736_v41 }
 0x40d   : > { %1843 = vst [vmem:[%s4643_s14 + $0xc0] sm:$0xf] %v3718_v44  ;;  %1859 = vst [vmem:[%s4643_s14 + $0x200] sm:$0xf] %v3734_v45 }
 0x40f   : > { %v4115_v46 = vpop.f32.mrb[60].mxu0  ;;  %v4131_v47 = vpop.f32.mrb[60].mxu1 }
 0x410   : > { %v3723_v48 = vpack.c.bf16 %v4115_v46, %v4115_v46  ;;  %v3739_v49 = vpack.c.bf16 %v4131_v47, %v4131_v47  ;;  %v1627_v50 = vpop.f32.mrb[61].mxu0  ;;  %v1691_v57 = vpop.f32.mrb[61].mxu1 }
 0x411   : > { %v3721_v51 = vpack.c.bf16 %v1627_v50, %v1627_v50  ;;  %v3737_v52 = vpack.c.bf16 %v1691_v57, %v1691_v57  ;;  %v4116_v53 = vpop.f32.mrb[62].mxu0  ;;  %v4132_v54 = vpop.f32.mrb[62].mxu1 }
 0x412   : > { %1848 = vst [vmem:[%s4643_s14 + $0x124] sm:$0xf] %v3723_v48  ;;  %1864 = vst [vmem:[%s4643_s14 + $0x264] sm:$0xf] %v3739_v49  ;;  %v3724_v55 = vpack.c.bf16 %v4116_v53, %v4116_v53  ;;  %v3740_v56 = vpack.c.bf16 %v4132_v54, %v4132_v54  ;;  %v1630_v63 = vpop.f32.mrb[63].mxu0  ;;  %v1694_v0 = vpop.f32.mrb[63].mxu1 }
 0x413   : > { %1846 = vst [vmem:[%s4643_s14 + $0xfc] sm:$0xf] %v3721_v51  ;;  %1862 = vst [vmem:[%s4643_s14 + $0x23c] sm:$0xf] %v3737_v52  ;;  %v3722_v3 = vpack.c.bf16 %v1630_v63, %v1630_v63  ;;  %v3738_v5 = vpack.c.bf16 %v1694_v0, %v1694_v0  ;;  %v4449_v51 = vld [vmem:[%s5470_s4 + $0x108] sm:$0xff]   ;;  %v4451_v53 = vld [vmem:[%s5470_s4 + $0x110] sm:$0xff]  }
 0x414   : > { %1849 = vst [vmem:[%s4643_s14 + $0x138] sm:$0xf] %v3724_v55  ;;  %1865 = vst [vmem:[%s4643_s14 + $0x278] sm:$0xf] %v3740_v56  ;;  %v4450_v52 = vld [vmem:[%s5470_s4 + $0x188] sm:$0xff]   ;;  %v4452_v54 = vld [vmem:[%s5470_s4 + $0x190] sm:$0xff]  }
 0x415   : > { %1847 = vst [vmem:[%s4643_s14 + $0x110] sm:$0xf] %v3722_v3  ;;  %1863 = vst [vmem:[%s4643_s14 + $0x250] sm:$0xf] %v3738_v5  ;;  %v4453_v55 = vld [vmem:[%s5470_s4 + $0x118] sm:$0xff]   ;;  %v4455_v63 = vld [vmem:[%s5470_s4 + $0x120] sm:$0xff]  }
 0x416   : > { %v4454_v56 = vld [vmem:[%s5470_s4 + $0x198] sm:$0xff]   ;;  %v4456_v0 = vld [vmem:[%s5470_s4 + $0x1a0] sm:$0xff]   ;;  %v4457_v3 = vld [vmem:[%s5470_s4 + $0x128] sm:$0xff]  }
 0x417   : > { %v1976_v14 = vpop.f32.mrb[64].mxu0  ;;  %v2601_v19 = vpop.f32.mrb[64].mxu1  ;;  %v4458_v5 = vld [vmem:[%s5470_s4 + $0x1a8] sm:$0xff]  }
 0x418   : > { %v1977_v22 = vadd.f32 %v3446_v1, %v1976_v14  ;;  %v2602_v24 = vadd.f32 %v3568_v9, %v2601_v19  ;;  %v4151_v27 = vpop.f32.mrb[65].mxu0  ;;  %v4217_v31 = vpop.f32.mrb[65].mxu1  ;;  %v4461_v14 = vld [vmem:[%s5470_s4 + $0x138] sm:$0xff]  }
 0x419   : > { %v1979_v32 = vpop.f32.mrb[66].mxu0  ;;  %v2604_v34 = vpop.f32.mrb[66].mxu1  ;;  %v4462_v19 = vld [vmem:[%s5470_s4 + $0x1b8] sm:$0xff]   ;;  %v4465_v27 = vld [vmem:[%s5470_s4 + $0x148] sm:$0xff]  }
 0x41a   : > { %v1980_v35 = vadd.f32 %v3446_v1, %v1979_v32  ;;  %v2605_v59 = vadd.f32 %v3568_v9, %v2604_v34  ;;  %v4152_v60 = vpop.f32.mrb[67].mxu0  ;;  %v4218_v61 = vpop.f32.mrb[67].mxu1  ;;  %v1998_v62 = vmax.f32 %v1977_v22, 0.0  ;;  %v2623_v2 = vmax.f32 %v2602_v24, 0.0  ;;  %v4463_v22 = vld [vmem:[%s5470_s4 + $0x140] sm:$0xff]   ;;  %v4466_v31 = vld [vmem:[%s5470_s4 + $0x1c8] sm:$0xff]  }
 0x41b   : > { %v4464_v24 = vld [vmem:[%s5470_s4 + $0x1c0] sm:$0xff]   ;;  %v4467_v32 = vld [vmem:[%s5470_s4 + $0x150] sm:$0xff]  }
 0x41c   : > { %v1999_v6 = vmax.f32 %v1980_v35, 0.0  ;;  %v2624_v7 = vmax.f32 %v2605_v59, 0.0  ;;  %v4468_v34 = vld [vmem:[%s5470_s4 + $0x1d0] sm:$0xff]   ;;  %v4469_v35 = vld [vmem:[%s5470_s4 + $0x158] sm:$0xff]   ;;  %v4471_v60 = vld [vmem:[%s5470_s4 + $0x160] sm:$0xff]  }
 0x41d   : > { %v4470_v59 = vld [vmem:[%s5470_s4 + $0x1d8] sm:$0xff]   ;;  %v4472_v61 = vld [vmem:[%s5470_s4 + $0x1e0] sm:$0xff]  }
 0x41e   : > { %v2036_v10 = vpack.c.bf16 %v1999_v6, %v1998_v62  ;;  %v2661_v11 = vpack.c.bf16 %v2624_v7, %v2623_v2  ;;  %v4473_v62 = vld [vmem:[%s5470_s4 + $0x168] sm:$0xff]   ;;  %v4475_v6 = vld [vmem:[%s5470_s4 + $0x170] sm:$0xff]  }
 0x41f   : > { %v1984_v15 = vpop.f32.mrb[68].mxu0  ;;  %v2609_v18 = vpop.f32.mrb[68].mxu1  ;;  %v4474_v2 = vld [vmem:[%s5470_s4 + $0x1e8] sm:$0xff]   ;;  %v4476_v7 = vld [vmem:[%s5470_s4 + $0x1f0] sm:$0xff]  }
 0x420   : > { %v1985_v23 = vadd.f32 %v3446_v1, %v1984_v15  ;;  %v2610_v25 = vadd.f32 %v3568_v9, %v2609_v18  ;;  %v4155_v26 = vpop.f32.mrb[69].mxu0  ;;  %4161 = vmatprep.subr.bf16.mxu0 %v2036_v10  ;;  %v4221_v28 = vpop.f32.mrb[69].mxu1  ;;  %4227 = vmatprep.subr.bf16.mxu1 %v2661_v11 }
 0x421   : > { %v1987_v29 = vpop.f32.mrb[70].mxu0  ;;  %4162 = vmatpush3.bf16.msra.mxu0 %v2036_v10  ;;  %v2612_v30 = vpop.f32.mrb[70].mxu1  ;;  %4228 = vmatpush3.bf16.msra.mxu1 %v2661_v11  ;;  %v4477_v10 = vld [vmem:[%s5470_s4 + $0x178] sm:$0xff]  }
 0x422   : > { %v1988_v33 = vadd.f32 %v3446_v1, %v1987_v29  ;;  %v2613_v36 = vadd.f32 %v3568_v9, %v2612_v30  ;;  %v4156_v37 = vpop.f32.mrb[71].mxu0  ;;  %v4222_v58 = vpop.f32.mrb[71].mxu1  ;;  %v2000_v4 = vmax.f32 %v1985_v23, 0.0  ;;  %v2625_v8 = vmax.f32 %v2610_v25, 0.0  ;;  %v4478_v11 = vld [vmem:[%s5470_s4 + $0x1f8] sm:$0xff]  }
 0x424   : > { %v2001_v12 = vmax.f32 %v1988_v33, 0.0  ;;  %v2626_v13 = vmax.f32 %v2613_v36, 0.0 }
 0x426   : > { %v2037_v16 = vpack.c.bf16 %v2001_v12, %v2000_v4  ;;  %v2662_v17 = vpack.c.bf16 %v2626_v13, %v2625_v8 }
 0x427   : > { %v1992_v20 = vpop.f32.mrb[72].mxu0  ;;  %v2617_v38 = vpop.f32.mrb[72].mxu1 }
 0x428   : > { %v1993_v21 = vadd.f32 %v3446_v1, %v1992_v20  ;;  %v2618_v39 = vadd.f32 %v3568_v9, %v2617_v38  ;;  %v4159_v40 = vpop.f32.mrb[73].mxu0  ;;  %4163 = vmatprep.subr.bf16.mxu0 %v2037_v16  ;;  %v4225_v41 = vpop.f32.mrb[73].mxu1  ;;  %4229 = vmatprep.subr.bf16.mxu1 %v2662_v17  ;;  %v4459_v1 = vld [vmem:[%s5470_s4 + $0x130] sm:$0xff]  }
 0x429   : > { %v1995_v42 = vpop.f32.mrb[74].mxu0  ;;  %4164 = vmatpush3.bf16.msra.mxu0 %v2037_v16  ;;  %v2620_v43 = vpop.f32.mrb[74].mxu1  ;;  %4230 = vmatpush3.bf16.msra.mxu1 %v2662_v17  ;;  %v4460_v9 = vld [vmem:[%s5470_s4 + $0x1b0] sm:$0xff]  }
 0x42a   : > { %v2002_v44 = vmax.f32 %v1993_v21, 0.0  ;;  %v2627_v45 = vmax.f32 %v2618_v39, 0.0  ;;  %v4160_v46 = vpop.f32.mrb[75].mxu0  ;;  %v4226_v47 = vpop.f32.mrb[75].mxu1 }
 0x42c   : > { %v2038_v48 = vpack.c.bf16 %v2002_v44, %v2002_v44  ;;  %v2663_v49 = vpack.c.bf16 %v2627_v45, %v2627_v45 }
 0x42e   : > { %4290 = vmatprep.subr.msk.bf16.mxu0 %vm916_vm2, %v2038_v48  ;;  %4291 = vmatprep.subr.msk.bf16.mxu1 %vm916_vm2, %v2663_v49  ;;  %v2168_v50 = vsel %vm916_vm2, %v2038_v48, 0  ;;  %v2793_v57 = vsel %vm916_vm2, %v2663_v49, 0 }
 0x42f   : > { %4166 = vmatpush3.bf16.msra.mxu0 %v2168_v50  ;;  %4232 = vmatpush3.bf16.msra.mxu1 %v2793_v57 }
 0x432   : > { %4168 = vmatmul.mubr.msk.bf16.vlgmr.msra.gmra.mrb[76].mxu0 %vm867_vm1, %v4449_v51  ;;  %4234 = vmatmul.mubr.msk.bf16.vlgmr.msra.gmra.mrb[76].mxu1 %vm867_vm1, %v4450_v52 }
 0x433   : > { %4171 = vmatprep.mubr.msk.bf16.mxu0 %vm867_vm1, %v4451_v53  ;;  %4237 = vmatprep.mubr.msk.bf16.mxu1 %vm867_vm1, %v4452_v54 }
 0x43a   : > { %4172 = vmatmul.mubr.msk.bf16.gmra.mrb[80].mxu0 %vm867_vm1, %v4453_v55  ;;  %4238 = vmatmul.mubr.msk.bf16.gmra.mrb[80].mxu1 %vm867_vm1, %v4454_v56 }
 0x43b   : > { %4175 = vmatprep.mubr.msk.bf16.mxu0 %vm867_vm1, %v4455_v63  ;;  %4241 = vmatprep.mubr.msk.bf16.mxu1 %vm867_vm1, %v4456_v0 }
 0x442   : > { %4176 = vmatmul.mubr.msk.bf16.gmra.mrb[84].mxu0 %vm867_vm1, %v4457_v3  ;;  %4242 = vmatmul.mubr.msk.bf16.gmra.mrb[84].mxu1 %vm867_vm1, %v4458_v5 }
 0x443   : > { %4179 = vmatprep.mubr.msk.bf16.mxu0 %vm867_vm1, %v4459_v1  ;;  %4245 = vmatprep.mubr.msk.bf16.mxu1 %vm867_vm1, %v4460_v9 }
 0x44a   : > { %4180 = vmatmul.mubr.msk.bf16.gmra.mrb[88].mxu0 %vm867_vm1, %v4461_v14  ;;  %4246 = vmatmul.mubr.msk.bf16.gmra.mrb[88].mxu1 %vm867_vm1, %v4462_v19 }
 0x44b   : > { %4183 = vmatprep.mubr.msk.bf16.mxu0 %vm867_vm1, %v4463_v22  ;;  %4249 = vmatprep.mubr.msk.bf16.mxu1 %vm867_vm1, %v4464_v24 }
 0x452   : > { %4184 = vmatmul.mubr.msk.bf16.gmra.mrb[92].mxu0 %vm867_vm1, %v4465_v27  ;;  %4250 = vmatmul.mubr.msk.bf16.gmra.mrb[92].mxu1 %vm867_vm1, %v4466_v31 }
 0x453   : > { %4187 = vmatprep.mubr.msk.bf16.mxu0 %vm867_vm1, %v4467_v32  ;;  %4253 = vmatprep.mubr.msk.bf16.mxu1 %vm867_vm1, %v4468_v34 }
 0x45a   : > { %4188 = vmatmul.mubr.msk.bf16.gmra.mrb[96].mxu0 %vm867_vm1, %v4469_v35  ;;  %4254 = vmatmul.mubr.msk.bf16.gmra.mrb[96].mxu1 %vm867_vm1, %v4470_v59 }
 0x45b   : > { %4191 = vmatprep.mubr.msk.bf16.mxu0 %vm867_vm1, %v4471_v60  ;;  %4257 = vmatprep.mubr.msk.bf16.mxu1 %vm867_vm1, %v4472_v61 }
 0x462   : > { %4192 = vmatmul.mubr.msk.bf16.gmra.mrb[100].mxu0 %vm867_vm1, %v4473_v62  ;;  %4258 = vmatmul.mubr.msk.bf16.gmra.mrb[100].mxu1 %vm867_vm1, %v4474_v2 }
 0x463   : > { %4195 = vmatprep.mubr.msk.bf16.mxu0 %vm867_vm1, %v4475_v6  ;;  %4261 = vmatprep.mubr.msk.bf16.mxu1 %vm867_vm1, %v4476_v7 }
 0x46a   : > { %4196 = vmatmul.mubr.msk.bf16.gmra.mrb[104].mxu0 %vm867_vm1, %v4477_v10  ;;  %4262 = vmatmul.mubr.msk.bf16.gmra.mrb[104].mxu1 %vm867_vm1, %v4478_v11 }
 0x505   : > { %v4169_v15 = vpop.f32.mrb[76].mxu0  ;;  %v4235_v18 = vpop.f32.mrb[76].mxu1 }
 0x506   : > { %v3743_v23 = vpack.c.bf16 %v4169_v15, %v4169_v15  ;;  %v3775_v25 = vpack.c.bf16 %v4235_v18, %v4235_v18  ;;  %v2204_v26 = vpop.f32.mrb[77].mxu0  ;;  %v2829_v28 = vpop.f32.mrb[77].mxu1 }
 0x507   : > { %v3741_v29 = vpack.c.bf16 %v2204_v26, %v2204_v26  ;;  %v3773_v30 = vpack.c.bf16 %v2829_v28, %v2829_v28  ;;  %v4170_v33 = vpop.f32.mrb[78].mxu0  ;;  %v4236_v36 = vpop.f32.mrb[78].mxu1 }
 0x508   : > { %2461 = vst [vmem:[%s4643_s14 + $0x30] sm:$0xf] %v3743_v23  ;;  %3086 = vst [vmem:[%s4643_s14 + $0x2c] sm:$0xf] %v3775_v25  ;;  %v3744_v37 = vpack.c.bf16 %v4170_v33, %v4170_v33  ;;  %v3776_v58 = vpack.c.bf16 %v4236_v36, %v4236_v36  ;;  %v2207_v4 = vpop.f32.mrb[79].mxu0  ;;  %v2832_v8 = vpop.f32.mrb[79].mxu1 }
 0x509   : > { %2459 = vst [vmem:[%s4643_s14 + $0x8] sm:$0xf] %v3741_v29  ;;  %3084 = vst [vmem:[%s4643_s14 + $0x4] sm:$0xf] %v3773_v30  ;;  %v3742_v12 = vpack.c.bf16 %v2207_v4, %v2207_v4  ;;  %v3774_v13 = vpack.c.bf16 %v2832_v8, %v2832_v8 }
 0x50a   : > { %2462 = vst [vmem:[%s4643_s14 + $0x44] sm:$0xf] %v3744_v37  ;;  %3087 = vst [vmem:[%s4643_s14 + $0x40] sm:$0xf] %v3776_v58 }
 0x50b   : > { %2460 = vst [vmem:[%s4643_s14 + $0x1c] sm:$0xf] %v3742_v12  ;;  %3085 = vst [vmem:[%s4643_s14 + $0x18] sm:$0xf] %v3774_v13 }
 0x50d   : > { %v4173_v16 = vpop.f32.mrb[80].mxu0  ;;  %v4239_v17 = vpop.f32.mrb[80].mxu1 }
 0x50e   : > { %v3747_v20 = vpack.c.bf16 %v4173_v16, %v4173_v16  ;;  %v3779_v38 = vpack.c.bf16 %v4239_v17, %v4239_v17  ;;  %v2220_v21 = vpop.f32.mrb[81].mxu0  ;;  %v2845_v39 = vpop.f32.mrb[81].mxu1 }
 0x50f   : > { %v3745_v40 = vpack.c.bf16 %v2220_v21, %v2220_v21  ;;  %v3777_v41 = vpack.c.bf16 %v2845_v39, %v2845_v39  ;;  %v4174_v42 = vpop.f32.mrb[82].mxu0  ;;  %v4240_v43 = vpop.f32.mrb[82].mxu1 }
 0x510   : > { %2465 = vst [vmem:[%s4643_s14 + $0x80] sm:$0xf] %v3747_v20  ;;  %3090 = vst [vmem:[%s4643_s14 + $0x7c] sm:$0xf] %v3779_v38  ;;  %v3748_v44 = vpack.c.bf16 %v4174_v42, %v4174_v42  ;;  %v3780_v45 = vpack.c.bf16 %v4240_v43, %v4240_v43  ;;  %v2223_v46 = vpop.f32.mrb[83].mxu0  ;;  %v2848_v47 = vpop.f32.mrb[83].mxu1 }
 0x511   : > { %2463 = vst [vmem:[%s4643_s14 + $0x58] sm:$0xf] %v3745_v40  ;;  %3088 = vst [vmem:[%s4643_s14 + $0x54] sm:$0xf] %v3777_v41  ;;  %v3746_v48 = vpack.c.bf16 %v2223_v46, %v2223_v46  ;;  %v3778_v49 = vpack.c.bf16 %v2848_v47, %v2848_v47 }
 0x512   : > { %2466 = vst [vmem:[%s4643_s14 + $0x94] sm:$0xf] %v3748_v44  ;;  %3091 = vst [vmem:[%s4643_s14 + $0x90] sm:$0xf] %v3780_v45 }
 0x513   : > { %2464 = vst [vmem:[%s4643_s14 + $0x6c] sm:$0xf] %v3746_v48  ;;  %3089 = vst [vmem:[%s4643_s14 + $0x68] sm:$0xf] %v3778_v49 }
 0x515   : > { %v4177_v50 = vpop.f32.mrb[84].mxu0  ;;  %v4243_v57 = vpop.f32.mrb[84].mxu1 }
 0x516   : > { %v3751_v51 = vpack.c.bf16 %v4177_v50, %v4177_v50  ;;  %v3783_v52 = vpack.c.bf16 %v4243_v57, %v4243_v57  ;;  %v2236_v53 = vpop.f32.mrb[85].mxu0  ;;  %v2861_v54 = vpop.f32.mrb[85].mxu1 }
 0x517   : > { %v3749_v55 = vpack.c.bf16 %v2236_v53, %v2236_v53  ;;  %v3781_v56 = vpack.c.bf16 %v2861_v54, %v2861_v54  ;;  %v4178_v63 = vpop.f32.mrb[86].mxu0  ;;  %v4244_v0 = vpop.f32.mrb[86].mxu1 }
 0x518   : > { %2469 = vst [vmem:[%s4643_s14 + $0xd0] sm:$0xf] %v3751_v51  ;;  %3094 = vst [vmem:[%s4643_s14 + $0xcc] sm:$0xf] %v3783_v52  ;;  %v3752_v3 = vpack.c.bf16 %v4178_v63, %v4178_v63  ;;  %v3784_v5 = vpack.c.bf16 %v4244_v0, %v4244_v0  ;;  %v2239_v1 = vpop.f32.mrb[87].mxu0  ;;  %v2864_v9 = vpop.f32.mrb[87].mxu1 }
 0x519   : > { %2467 = vst [vmem:[%s4643_s14 + $0xa8] sm:$0xf] %v3749_v55  ;;  %3092 = vst [vmem:[%s4643_s14 + $0xa4] sm:$0xf] %v3781_v56  ;;  %v3750_v14 = vpack.c.bf16 %v2239_v1, %v2239_v1  ;;  %v3782_v19 = vpack.c.bf16 %v2864_v9, %v2864_v9 }
 0x51a   : > { %2470 = vst [vmem:[%s4643_s14 + $0xe4] sm:$0xf] %v3752_v3  ;;  %3095 = vst [vmem:[%s4643_s14 + $0xe0] sm:$0xf] %v3784_v5 }
 0x51b   : > { %2468 = vst [vmem:[%s4643_s14 + $0xbc] sm:$0xf] %v3750_v14  ;;  %3093 = vst [vmem:[%s4643_s14 + $0xb8] sm:$0xf] %v3782_v19 }
 0x51d   : > { %v4181_v22 = vpop.f32.mrb[88].mxu0  ;;  %v4247_v24 = vpop.f32.mrb[88].mxu1 }
 0x51e   : > { %v3755_v27 = vpack.c.bf16 %v4181_v22, %v4181_v22  ;;  %v3787_v31 = vpack.c.bf16 %v4247_v24, %v4247_v24  ;;  %v2252_v32 = vpop.f32.mrb[89].mxu0  ;;  %v2877_v34 = vpop.f32.mrb[89].mxu1 }
 0x51f   : > { %v3753_v35 = vpack.c.bf16 %v2252_v32, %v2252_v32  ;;  %v3785_v59 = vpack.c.bf16 %v2877_v34, %v2877_v34  ;;  %v4182_v60 = vpop.f32.mrb[90].mxu0  ;;  %v4248_v61 = vpop.f32.mrb[90].mxu1 }
 0x520   : > { %2473 = vst [vmem:[%s4643_s14 + $0x120] sm:$0xf] %v3755_v27  ;;  %3098 = vst [vmem:[%s4643_s14 + $0x11c] sm:$0xf] %v3787_v31  ;;  %v3756_v62 = vpack.c.bf16 %v4182_v60, %v4182_v60  ;;  %v3788_v2 = vpack.c.bf16 %v4248_v61, %v4248_v61  ;;  %v2255_v6 = vpop.f32.mrb[91].mxu0  ;;  %v2880_v7 = vpop.f32.mrb[91].mxu1 }
 0x521   : > { %2471 = vst [vmem:[%s4643_s14 + $0xf8] sm:$0xf] %v3753_v35  ;;  %3096 = vst [vmem:[%s4643_s14 + $0xf4] sm:$0xf] %v3785_v59  ;;  %v3754_v10 = vpack.c.bf16 %v2255_v6, %v2255_v6  ;;  %v3786_v11 = vpack.c.bf16 %v2880_v7, %v2880_v7 }
 0x522   : > { %2474 = vst [vmem:[%s4643_s14 + $0x134] sm:$0xf] %v3756_v62  ;;  %3099 = vst [vmem:[%s4643_s14 + $0x130] sm:$0xf] %v3788_v2 }
 0x523   : > { %2472 = vst [vmem:[%s4643_s14 + $0x10c] sm:$0xf] %v3754_v10  ;;  %3097 = vst [vmem:[%s4643_s14 + $0x108] sm:$0xf] %v3786_v11 }
 0x525   : > { %v4185_v15 = vpop.f32.mrb[92].mxu0  ;;  %v4251_v18 = vpop.f32.mrb[92].mxu1 }
 0x526   : > { %v3759_v23 = vpack.c.bf16 %v4185_v15, %v4185_v15  ;;  %v3791_v25 = vpack.c.bf16 %v4251_v18, %v4251_v18  ;;  %v2268_v26 = vpop.f32.mrb[93].mxu0  ;;  %v2893_v28 = vpop.f32.mrb[93].mxu1 }
 0x527   : > { %v3757_v29 = vpack.c.bf16 %v2268_v26, %v2268_v26  ;;  %v3789_v30 = vpack.c.bf16 %v2893_v28, %v2893_v28  ;;  %v4186_v33 = vpop.f32.mrb[94].mxu0  ;;  %v4252_v36 = vpop.f32.mrb[94].mxu1 }
 0x528   : > { %2477 = vst [vmem:[%s4643_s14 + $0x170] sm:$0xf] %v3759_v23  ;;  %3102 = vst [vmem:[%s4643_s14 + $0x16c] sm:$0xf] %v3791_v25  ;;  %v3760_v37 = vpack.c.bf16 %v4186_v33, %v4186_v33  ;;  %v3792_v58 = vpack.c.bf16 %v4252_v36, %v4252_v36  ;;  %v2271_v4 = vpop.f32.mrb[95].mxu0  ;;  %v2896_v8 = vpop.f32.mrb[95].mxu1 }
 0x529   : > { %2475 = vst [vmem:[%s4643_s14 + $0x148] sm:$0xf] %v3757_v29  ;;  %3100 = vst [vmem:[%s4643_s14 + $0x144] sm:$0xf] %v3789_v30  ;;  %v3758_v12 = vpack.c.bf16 %v2271_v4, %v2271_v4  ;;  %v3790_v13 = vpack.c.bf16 %v2896_v8, %v2896_v8 }
 0x52a   : > { %2478 = vst [vmem:[%s4643_s14 + $0x184] sm:$0xf] %v3760_v37  ;;  %3103 = vst [vmem:[%s4643_s14 + $0x180] sm:$0xf] %v3792_v58 }
 0x52b   : > { %2476 = vst [vmem:[%s4643_s14 + $0x15c] sm:$0xf] %v3758_v12  ;;  %3101 = vst [vmem:[%s4643_s14 + $0x158] sm:$0xf] %v3790_v13 }
 0x52d   : > { %v4189_v16 = vpop.f32.mrb[96].mxu0  ;;  %v4255_v17 = vpop.f32.mrb[96].mxu1 }
 0x52e   : > { %v3763_v20 = vpack.c.bf16 %v4189_v16, %v4189_v16  ;;  %v3795_v38 = vpack.c.bf16 %v4255_v17, %v4255_v17  ;;  %v2284_v21 = vpop.f32.mrb[97].mxu0  ;;  %v2909_v39 = vpop.f32.mrb[97].mxu1 }
 0x52f   : > { %v3761_v40 = vpack.c.bf16 %v2284_v21, %v2284_v21  ;;  %v3793_v41 = vpack.c.bf16 %v2909_v39, %v2909_v39  ;;  %v4190_v42 = vpop.f32.mrb[98].mxu0  ;;  %v4256_v43 = vpop.f32.mrb[98].mxu1 }
 0x530   : > { %2481 = vst [vmem:[%s4643_s14 + $0x1c0] sm:$0xf] %v3763_v20  ;;  %3106 = vst [vmem:[%s4643_s14 + $0x1bc] sm:$0xf] %v3795_v38  ;;  %v3764_v44 = vpack.c.bf16 %v4190_v42, %v4190_v42  ;;  %v3796_v45 = vpack.c.bf16 %v4256_v43, %v4256_v43  ;;  %v2287_v46 = vpop.f32.mrb[99].mxu0  ;;  %v2912_v47 = vpop.f32.mrb[99].mxu1 }
 0x531   : > { %2479 = vst [vmem:[%s4643_s14 + $0x198] sm:$0xf] %v3761_v40  ;;  %3104 = vst [vmem:[%s4643_s14 + $0x194] sm:$0xf] %v3793_v41  ;;  %v3762_v48 = vpack.c.bf16 %v2287_v46, %v2287_v46  ;;  %v3794_v49 = vpack.c.bf16 %v2912_v47, %v2912_v47 }
 0x532   : > { %2482 = vst [vmem:[%s4643_s14 + $0x1d4] sm:$0xf] %v3764_v44  ;;  %3107 = vst [vmem:[%s4643_s14 + $0x1d0] sm:$0xf] %v3796_v45 }
 0x533   : > { %2480 = vst [vmem:[%s4643_s14 + $0x1ac] sm:$0xf] %v3762_v48  ;;  %3105 = vst [vmem:[%s4643_s14 + $0x1a8] sm:$0xf] %v3794_v49 }
 0x535   : > { %v4193_v50 = vpop.f32.mrb[100].mxu0  ;;  %v4259_v57 = vpop.f32.mrb[100].mxu1 }
 0x536   : > { %v3767_v51 = vpack.c.bf16 %v4193_v50, %v4193_v50  ;;  %v3799_v52 = vpack.c.bf16 %v4259_v57, %v4259_v57  ;;  %v2300_v53 = vpop.f32.mrb[101].mxu0  ;;  %v2925_v54 = vpop.f32.mrb[101].mxu1 }
 0x537   : > { %v3765_v55 = vpack.c.bf16 %v2300_v53, %v2300_v53  ;;  %v3797_v56 = vpack.c.bf16 %v2925_v54, %v2925_v54  ;;  %v4194_v63 = vpop.f32.mrb[102].mxu0  ;;  %v4260_v0 = vpop.f32.mrb[102].mxu1 }
 0x538   : > { %2485 = vst [vmem:[%s4643_s14 + $0x210] sm:$0xf] %v3767_v51  ;;  %3110 = vst [vmem:[%s4643_s14 + $0x20c] sm:$0xf] %v3799_v52  ;;  %v3768_v3 = vpack.c.bf16 %v4194_v63, %v4194_v63  ;;  %v3800_v5 = vpack.c.bf16 %v4260_v0, %v4260_v0  ;;  %v2303_v1 = vpop.f32.mrb[103].mxu0  ;;  %v2928_v9 = vpop.f32.mrb[103].mxu1 }
 0x539   : > { %2483 = vst [vmem:[%s4643_s14 + $0x1e8] sm:$0xf] %v3765_v55  ;;  %3108 = vst [vmem:[%s4643_s14 + $0x1e4] sm:$0xf] %v3797_v56  ;;  %v3766_v14 = vpack.c.bf16 %v2303_v1, %v2303_v1  ;;  %v3798_v19 = vpack.c.bf16 %v2928_v9, %v2928_v9 }
 0x53a   : > { %2486 = vst [vmem:[%s4643_s14 + $0x224] sm:$0xf] %v3768_v3  ;;  %3111 = vst [vmem:[%s4643_s14 + $0x220] sm:$0xf] %v3800_v5 }
 0x53b   : > { %2484 = vst [vmem:[%s4643_s14 + $0x1fc] sm:$0xf] %v3766_v14  ;;  %3109 = vst [vmem:[%s4643_s14 + $0x1f8] sm:$0xf] %v3798_v19 }
 0x53d   : > { %v4197_v22 = vpop.f32.mrb[104].mxu0  ;;  %v4263_v24 = vpop.f32.mrb[104].mxu1 }
 0x53e   : > { %v3771_v27 = vpack.c.bf16 %v4197_v22, %v4197_v22  ;;  %v3803_v31 = vpack.c.bf16 %v4263_v24, %v4263_v24  ;;  %v2316_v32 = vpop.f32.mrb[105].mxu0  ;;  %v2941_v34 = vpop.f32.mrb[105].mxu1 }
 0x53f   : > { %v3769_v35 = vpack.c.bf16 %v2316_v32, %v2316_v32  ;;  %v3801_v59 = vpack.c.bf16 %v2941_v34, %v2941_v34  ;;  %v4198_v60 = vpop.f32.mrb[106].mxu0  ;;  %v4264_v61 = vpop.f32.mrb[106].mxu1 }
 0x540   : > { %2489 = vst [vmem:[%s4643_s14 + $0x260] sm:$0xf] %v3771_v27  ;;  %3114 = vst [vmem:[%s4643_s14 + $0x25c] sm:$0xf] %v3803_v31  ;;  %v3772_v62 = vpack.c.bf16 %v4198_v60, %v4198_v60  ;;  %v3804_v2 = vpack.c.bf16 %v4264_v61, %v4264_v61  ;;  %v2319_v6 = vpop.f32.mrb[107].mxu0  ;;  %v2944_v7 = vpop.f32.mrb[107].mxu1 }
 0x541   : > { %2487 = vst [vmem:[%s4643_s14 + $0x238] sm:$0xf] %v3769_v35  ;;  %3112 = vst [vmem:[%s4643_s14 + $0x234] sm:$0xf] %v3801_v59  ;;  %v3770_v10 = vpack.c.bf16 %v2319_v6, %v2319_v6  ;;  %v3802_v11 = vpack.c.bf16 %v2944_v7, %v2944_v7 }
 0x542   : > { %2490 = vst [vmem:[%s4643_s14 + $0x274] sm:$0xf] %v3772_v62  ;;  %3115 = vst [vmem:[%s4643_s14 + $0x270] sm:$0xf] %v3804_v2 }
 0x543   : > { %2488 = vst [vmem:[%s4643_s14 + $0x24c] sm:$0xf] %v3770_v10  ;;  %3113 = vst [vmem:[%s4643_s14 + $0x248] sm:$0xf] %v3802_v11 }
 0x544   : > { %4492 = shalt.err (!%p4489_p3)
}
 0x545   : > { %s4493_s30 = scalar_lea.hbm %s5413_s23, 10240  ;;  %s4497_s10 = scalar_lea.hbm %s5471_s5, 20480 }
 0x546   : > { %p4494_p4 = scmp.ne.s32.totalorder %s5413_s23, %s4493_s30  ;;  %p4498_p9 = scmp.lt.u32.totalorder %s5413_s23, %s5471_s5 }
 0x547   : > { %p4499_p10 = scmp.lt.u32.totalorder %s4497_s10, %s4493_s30  ;;  %p4501_p12 = scmp.lt.u32.totalorder %s4493_s30, %s5413_s23 }
 0x548   : > { %p4495_p7 = pnand %p4494_p4, %p4616_p5 }
 0x549   : > { %p4500_p11 = por %p4499_p10, %p4498_p9 }
 0x54a   : > { %p4496_p8 = pneg %p4495_p7 }
 0x54b   : > { %p4502_p13 = por %p4501_p12, %p4500_p11 }
 0x54d   : > { %p4503_p0 = pnand %p4502_p13, %p4496_p8 }
 0x54f   : > { %4506 = shalt.err (!%p4503_p0)
}
 0x550   : > { %s4546_s13 = smov 320   ;;  %s4547_s15 = smov 20  }
 0x551   : > { %4294 = dma.vmem_to_hbm [thread:$0]  (%p4616_p5), %s5415_s16, 10240, %s5413_s23, %s5425_s25, %s4546_s13, %s4546_s13, %s4547_s15  }
 0x552 PF: > { %p4300_p1 = scmp.ge.s32.totalorder %s4541_s21, 2  ;;  %s3145_s22 = sand.u32 1, %s4529_s18  }
 0x553   : > { %s3146_s17 = scalar_lea.sflag [#allocation3], %s3145_s22 }
 0x554   : > { %p4297_p2 = pnand %p4300_p1, %p4620_p6 }
 0x556   : > { %4524 = dma.done.wait (!%p4297_p2), %s3146_s17, 10240  }
 0x557   : > { %4526 = vsyncadd (!%p4297_p2), %s3146_s17, 4294957056  ;;  %p15_p3 = scmp.ge.s32.totalorder %s4603_s24, 4   ;;  %s5474_s18 = smov %s4533_s19 }
 0x558   : > { %s5475_s19 = smov %s4537_s20  ;;  %s5476_s20 = smov %s4614_s27 }
 0x559   : > { %s5477_s21 = smov %s4603_s24  ;;  %17 = sbr.rel (!%p15_p3) target bundleno = 3 (0x3), region = 84 }
 0x560   :  { %3151 = vsyncpa [#allocation3], 1 }
 0x561   :  { %3153 = vsyncpa [#allocation3 + $0x1], 1 }

</bundles_post_ra>
